<compile_context>
chip_gen: v7x
topology: tpu7x:2x2x1
jax: 0.10.0
libtpu: 0.0.40
codegen_flags: <defaults>
</compile_context>

<pallas_src>
import functools

import jax
import jax.numpy as jnp
from jax.experimental import pallas as pl
from jax.experimental.pallas import tpu as pltpu


def residual_kernel(x_ref, w1_ref, w2_ref, o_ref, *, seq_len):
    # x_ref/o_ref block: (rows, C) bf16, rows = whole number of sequences * seq_len.
    # w1_ref: (3, C, Cr) bf16; w2_ref: (Cr, C) bf16 (VMEM-resident across grid steps).
    x = x_ref[...]                                     # (rows, C) bf16
    x_f32 = x.astype(jnp.float32)
    h = jnp.maximum(x_f32, 0.0).astype(jnp.bfloat16)   # relu_1 (f32 compare; bf16 for MXU)

    rows = h.shape[0]
    # Per-sequence position, built at (rows, 1) width only (broadcast into the selects).
    pos = jax.lax.broadcasted_iota(jnp.int32, (rows, 1), 0) % seq_len

    # conv_1 (kernel_size=3, padding=1, no bias): three partial matmuls, then shift/mask the
    # narrow (rows, Cr) partials instead of rolling/masking/concatenating full-width inputs.
    p0 = jnp.dot(h, w1_ref[0], preferred_element_type=jnp.float32)   # pairs with x[l-1]
    p1 = jnp.dot(h, w1_ref[1], preferred_element_type=jnp.float32)   # pairs with x[l]
    p2 = jnp.dot(h, w1_ref[2], preferred_element_type=jnp.float32)   # pairs with x[l+1]
    # pltpu.roll requires non-negative shifts: roll by rows-1 == roll by -1.
    y1 = (jnp.where(pos == 0, 0.0, pltpu.roll(p0, shift=1, axis=0))
          + p1
          + jnp.where(pos == seq_len - 1, 0.0, pltpu.roll(p2, shift=rows - 1, axis=0)))

    h2 = jnp.maximum(y1, 0.0).astype(jnp.bfloat16)                   # relu_2
    # conv_2 (kernel_size=1, no bias) as one matmul.
    y2 = jnp.dot(h2, w2_ref[...], preferred_element_type=jnp.float32)  # (rows, C)

    o_ref[...] = (x_f32 + y2).astype(o_ref.dtype)                    # residual add (f32 -> bf16)


def _pick_seq_per_block(n_seq, seq_len, target_rows, min_blocks):
    """Largest divisor of n_seq with 8-aligned rows, <= target_rows, keeping >= min_blocks steps."""
    divisors = [d for d in range(1, n_seq + 1) if n_seq % d == 0]
    aligned = [d for d in divisors if (d * seq_len) % 8 == 0] or [n_seq]  # full array is legal
    for need_min_blocks in (True, False):
        fitting = [d for d in aligned
                   if d * seq_len <= target_rows
                   and (not need_min_blocks or n_seq // d >= min_blocks)]
        if fitting:
            return max(fitting)
    return min(aligned)


def residual_forward(x_nlc, w1_kio, w2_io, *, seq_per_block=None, target_rows=1024,
                     min_blocks=4):
    """x_nlc: (N, L, C_in); w1_kio: (3, C_in, C_res); w2_io: (C_res, C_out == C_in)."""
    N, L, C = x_nlc.shape
    k3, c_in, Cr = w1_kio.shape
    assert k3 == 3 and c_in == C and w2_io.shape == (Cr, C)

    if seq_per_block is None:
        seq_per_block = _pick_seq_per_block(N, L, target_rows, min_blocks)
    assert N % seq_per_block == 0
    block_rows = seq_per_block * L
    grid = (N // seq_per_block,)

    # bf16 HBM I/O (halves bandwidth); fold batch into the row axis; bf16 weights for the MXU.
    x2d = x_nlc.reshape(N * L, C).astype(jnp.bfloat16)
    w1 = w1_kio.astype(jnp.bfloat16)        # (3, C, Cr)
    w2 = w2_io.astype(jnp.bfloat16)         # (Cr, C)

    flops = 2 * N * L * (3 * C * Cr + Cr * C)
    bytes_accessed = 2 * x2d.size * 2 + w1.size * 2 + w2.size * 2   # bf16 in/out + weights

    out2d = pl.pallas_call(
        functools.partial(residual_kernel, seq_len=L),
        out_shape=jax.ShapeDtypeStruct((N * L, C), jnp.bfloat16),
        grid_spec=pltpu.PrefetchScalarGridSpec(
            num_scalar_prefetch=0,
            grid=grid,
            in_specs=[
                pl.BlockSpec((block_rows, C), lambda i: (i, 0)),
                pl.BlockSpec((3, C, Cr), lambda i: (0, 0, 0)),   # weights VMEM-resident
                pl.BlockSpec((Cr, C), lambda i: (0, 0)),
            ],
            out_specs=pl.BlockSpec((block_rows, C), lambda i: (i, 0)),
        ),
        compiler_params=pltpu.CompilerParams(
            dimension_semantics=("parallel",),
            vmem_limit_bytes=32 * 1024 * 1024,   # safe on v7x's 64 MiB physical VMEM
        ),
        cost_estimate=pl.CostEstimate(
            flops=flops, transcendentals=0, bytes_accessed=bytes_accessed),
        input_output_aliases={0: 0},             # x2d is a temporary -> free to donate
    )(x2d, w1, w2)
    return out2d.reshape(N, L, C).astype(x_nlc.dtype)


def residual_reference(x_nlc, w1_kio, w2_io):
    """Pure-JAX reference mirroring the kernel's bf16-MXU / f32-accumulate precision."""
    xb = x_nlc.astype(jnp.bfloat16)
    h = jnp.maximum(xb.astype(jnp.float32), 0.0).astype(jnp.bfloat16)
    h_prev = jnp.pad(h, ((0, 0), (1, 0), (0, 0)))[:, :-1, :]
    h_next = jnp.pad(h, ((0, 0), (0, 1), (0, 0)))[:, 1:, :]
    w1 = w1_kio.astype(jnp.bfloat16)
    y1 = (jnp.einsum("nlc,cr->nlr", h_prev, w1[0], preferred_element_type=jnp.float32)
          + jnp.einsum("nlc,cr->nlr", h, w1[1], preferred_element_type=jnp.float32)
          + jnp.einsum("nlc,cr->nlr", h_next, w1[2], preferred_element_type=jnp.float32))
    h2 = jnp.maximum(y1, 0.0).astype(jnp.bfloat16)
    y2 = jnp.einsum("nlr,rc->nlc", h2, w2_io.astype(jnp.bfloat16),
                    preferred_element_type=jnp.float32)
    out = (xb.astype(jnp.float32) + y2).astype(jnp.bfloat16)
    return out.astype(x_nlc.dtype)


if __name__ == "__main__":
    # Module config: in_channels == num_hiddens (required for the residual add).
    in_channels = 128      # == num_hiddens (multiple of 128 -> lane-dense stores)
    num_hiddens = 128
    num_residual_hiddens = 32
    N, L = 16, 128         # 2048 rows total -> 512-row tiles, grid=(4,) (>= 2 per TC on v7x)

    key = jax.random.PRNGKey(0)
    kx, k1, k2 = jax.random.split(key, 3)

    # torch Conv1d weight shapes: conv_1 (C_res, C_in, 3), conv_2 (C_out, C_res, 1); no bias.
    w1_torch = jax.random.normal(k1, (num_residual_hiddens, in_channels, 3), jnp.float32)
    w1_torch = w1_torch * jnp.sqrt(2.0 / (in_channels * 3))
    w2_torch = jax.random.normal(k2, (num_hiddens, num_residual_hiddens, 1), jnp.float32)
    w2_torch = w2_torch * jnp.sqrt(2.0 / num_residual_hiddens)
    # TODO(synk): weight_norm reparameterization (g * v/||v||) not modeled; pre-fold weights
    # outside the kernel if use_kaiming_normal=True in the PyTorch module.

    # Pre-transpose weights for the channels-last matmul formulation.
    w1_kio = jnp.transpose(w1_torch, (2, 1, 0))        # (3, C_in, C_res)
    w2_io = jnp.transpose(w2_torch[:, :, 0], (1, 0))   # (C_res, C_out)

    # Input in PyTorch layout (N, C, L), converted to kernel layout (N, L, C).
    x_ncl = jax.random.normal(kx, (N, in_channels, L), jnp.float32)
    x_nlc = jnp.transpose(x_ncl, (0, 2, 1))

    out = jax.block_until_ready(residual_forward(x_nlc, w1_kio, w2_io))
    ref = residual_reference(x_nlc, w1_kio, w2_io)

    assert out.shape == (N, L, in_channels)
    assert jnp.allclose(out, ref, atol=2e-2, rtol=2e-2), "mismatch vs reference"

    print("KERNEL_OK")
</pallas_src>

<mosaic_0001>
module attributes {stable_mosaic.version = 11 : i64} {
  func.func @residual_kernel(%arg0: i32, %arg1: memref<512x128xbf16, #tpu.memory_space<vmem>>, %arg2: memref<3x128x32xbf16, #tpu.memory_space<vmem>>, %arg3: memref<32x128xbf16, #tpu.memory_space<vmem>>, %arg4: memref<512x128xbf16, #tpu.memory_space<vmem>>) attributes {dimension_semantics = [#tpu.dimension_semantics<parallel>], iteration_bounds = array<i64: 4>, scalar_prefetch = 0 : i64, scratch_operands = 0 : i64, tpu.core_type = #tpu.core_type<tc>, window_params = [{transform_indices = @transform_0, window_bounds = array<i64: 512, 128>}, {pipeline_mode = #tpu.pipeline_mode<synchronous>, transform_indices = @transform_1, window_bounds = array<i64: 3, 128, 32>}, {pipeline_mode = #tpu.pipeline_mode<synchronous>, transform_indices = @transform_2, window_bounds = array<i64: 32, 128>}, {transform_indices = @transform_3, window_bounds = array<i64: 512, 128>}]} {
    %c0 = arith.constant 0 : index
    %c0_0 = arith.constant 0 : index
    %0 = vector.load %arg1[%c0, %c0_0] : memref<512x128xbf16, #tpu.memory_space<vmem>>, vector<512x128xbf16>
    %1 = arith.extf %0 : vector<512x128xbf16> to vector<512x128xf32>
    %cst = arith.constant 0.000000e+00 : f32
    %2 = vector.broadcast %cst : f32 to vector<512x128xf32>
    %3 = arith.maximumf %1, %2 : vector<512x128xf32>
    %4 = arith.truncf %3 : vector<512x128xf32> to vector<512x128xbf16>
    %5 = tpu.iota {dimensions = array<i32: 0>} : vector<512x1xi32>
    %c128_i32 = arith.constant 128 : i32
    %c0_i32 = arith.constant 0 : i32
    %6 = arith.cmpi eq, %c128_i32, %c0_i32 : i32
    %c1_i32 = arith.constant 1 : i32
    %7 = arith.select %6, %c1_i32, %c128_i32 : i32
    %8 = vector.broadcast %7 : i32 to vector<512x1xi32>
    %9 = arith.remsi %5, %8 : vector<512x1xi32>
    %c0_i32_1 = arith.constant 0 : i32
    %10 = vector.broadcast %c0_i32_1 : i32 to vector<512x1xi32>
    %11 = arith.cmpi ne, %9, %10 : vector<512x1xi32>
    %c0_i32_2 = arith.constant 0 : i32
    %12 = vector.broadcast %c0_i32_2 : i32 to vector<512x1xi32>
    %13 = arith.cmpi slt, %9, %12 : vector<512x1xi32>
    %c0_i32_3 = arith.constant 0 : i32
    %14 = arith.cmpi slt, %7, %c0_i32_3 : i32
    %15 = vector.broadcast %14 : i1 to vector<512x1xi1>
    %16 = vector.broadcast %15 : vector<512x1xi1> to vector<512x1xi1>
    %17 = arith.xori %13, %16 : vector<512x1xi1>
    %18 = arith.andi %17, %11 : vector<512x1xi1>
    %19 = vector.broadcast %7 : i32 to vector<512x1xi32>
    %20 = arith.addi %9, %19 : vector<512x1xi32>
    %21 = arith.select %18, %20, %9 : vector<512x1xi1>, vector<512x1xi32>
    %c0_4 = arith.constant 0 : index
    %c0_5 = arith.constant 0 : index
    %c0_6 = arith.constant 0 : index
    %22 = vector.load %arg2[%c0_4, %c0_5, %c0_6] : memref<3x128x32xbf16, #tpu.memory_space<vmem>>, vector<1x128x32xbf16>
    %23 = vector.shape_cast %22 : vector<1x128x32xbf16> to vector<128x32xbf16>
    %cst_7 = arith.constant dense<0.000000e+00> : vector<512x32xf32>
    %24 = tpu.matmul %4, %23, %cst_7 {dimension_numbers = #tpu.dot_dimension_numbers<[1], [0], [0], [1], [0, 0, 1, 1], [], []>} : vector<512x128xbf16>, vector<128x32xbf16>, vector<512x32xf32> -> vector<512x32xf32>
    %c1 = arith.constant 1 : index
    %c0_8 = arith.constant 0 : index
    %c0_9 = arith.constant 0 : index
    %25 = vector.load %arg2[%c1, %c0_8, %c0_9] : memref<3x128x32xbf16, #tpu.memory_space<vmem>>, vector<1x128x32xbf16>
    %26 = vector.shape_cast %25 : vector<1x128x32xbf16> to vector<128x32xbf16>
    %cst_10 = arith.constant dense<0.000000e+00> : vector<512x32xf32>
    %27 = tpu.matmul %4, %26, %cst_10 {dimension_numbers = #tpu.dot_dimension_numbers<[1], [0], [0], [1], [0, 0, 1, 1], [], []>} : vector<512x128xbf16>, vector<128x32xbf16>, vector<512x32xf32> -> vector<512x32xf32>
    %c2 = arith.constant 2 : index
    %c0_11 = arith.constant 0 : index
    %c0_12 = arith.constant 0 : index
    %28 = vector.load %arg2[%c2, %c0_11, %c0_12] : memref<3x128x32xbf16, #tpu.memory_space<vmem>>, vector<1x128x32xbf16>
    %29 = vector.shape_cast %28 : vector<1x128x32xbf16> to vector<128x32xbf16>
    %cst_13 = arith.constant dense<0.000000e+00> : vector<512x32xf32>
    %30 = tpu.matmul %4, %29, %cst_13 {dimension_numbers = #tpu.dot_dimension_numbers<[1], [0], [0], [1], [0, 0, 1, 1], [], []>} : vector<512x128xbf16>, vector<128x32xbf16>, vector<512x32xf32> -> vector<512x32xf32>
    %c0_i32_14 = arith.constant 0 : i32
    %31 = vector.broadcast %c0_i32_14 : i32 to vector<512x1xi32>
    %32 = arith.cmpi eq, %21, %31 : vector<512x1xi32>
    %c1_i32_15 = arith.constant 1 : i32
    %33 = tpu.dynamic_rotate %24 by %c1_i32_15 dim 0 : vector<512x32xf32>, i32 -> vector<512x32xf32>
    %cst_16 = arith.constant 0.000000e+00 : f32
    %34 = vector.shape_cast %32 : vector<512x1xi1> to vector<512x1xi1>
    %35 = vector.broadcast %34 : vector<512x1xi1> to vector<512x32xi1>
    %36 = vector.broadcast %cst_16 : f32 to vector<512x32xf32>
    %37 = arith.select %35, %36, %33 : vector<512x32xi1>, vector<512x32xf32>
    %38 = arith.addf %37, %27 : vector<512x32xf32>
    %c127_i32 = arith.constant 127 : i32
    %39 = vector.broadcast %c127_i32 : i32 to vector<512x1xi32>
    %40 = arith.cmpi eq, %21, %39 : vector<512x1xi32>
    %c511_i32 = arith.constant 511 : i32
    %41 = tpu.dynamic_rotate %30 by %c511_i32 dim 0 : vector<512x32xf32>, i32 -> vector<512x32xf32>
    %cst_17 = arith.constant 0.000000e+00 : f32
    %42 = vector.shape_cast %40 : vector<512x1xi1> to vector<512x1xi1>
    %43 = vector.broadcast %42 : vector<512x1xi1> to vector<512x32xi1>
    %44 = vector.broadcast %cst_17 : f32 to vector<512x32xf32>
    %45 = arith.select %43, %44, %41 : vector<512x32xi1>, vector<512x32xf32>
    %46 = arith.addf %38, %45 : vector<512x32xf32>
    %cst_18 = arith.constant 0.000000e+00 : f32
    %47 = vector.broadcast %cst_18 : f32 to vector<512x32xf32>
    %48 = arith.maximumf %46, %47 : vector<512x32xf32>
    %49 = arith.truncf %48 : vector<512x32xf32> to vector<512x32xbf16>
    %c0_19 = arith.constant 0 : index
    %c0_20 = arith.constant 0 : index
    %50 = vector.load %arg3[%c0_19, %c0_20] : memref<32x128xbf16, #tpu.memory_space<vmem>>, vector<32x128xbf16>
    %cst_21 = arith.constant dense<0.000000e+00> : vector<512x128xf32>
    %51 = tpu.matmul %49, %50, %cst_21 {dimension_numbers = #tpu.dot_dimension_numbers<[1], [0], [0], [1], [0, 0, 1, 1], [], []>} : vector<512x32xbf16>, vector<32x128xbf16>, vector<512x128xf32> -> vector<512x128xf32>
    %52 = arith.addf %1, %51 : vector<512x128xf32>
    %53 = arith.truncf %52 : vector<512x128xf32> to vector<512x128xbf16>
    %c0_22 = arith.constant 0 : index
    %c0_23 = arith.constant 0 : index
    %54 = vector.load %arg4[%c0_22, %c0_23] : memref<512x128xbf16, #tpu.memory_space<vmem>>, vector<512x128xbf16>
    tpu.vector_store %arg4[%c0_22, %c0_23], %53 {strides = array<i32>} : memref<512x128xbf16, #tpu.memory_space<vmem>>, vector<512x128xbf16>,
    return
  }
  func.func @transform_0(%arg0: i32) -> (i32, i32) {
    %c0_i32 = arith.constant 0 : i32
    %c0_i32_0 = arith.constant 0 : i32
    return %arg0, %c0_i32 : i32, i32
  }
  func.func @transform_1(%arg0: i32) -> (i32, i32, i32) {
    %c0_i32 = arith.constant 0 : i32
    %c0_i32_0 = arith.constant 0 : i32
    %c0_i32_1 = arith.constant 0 : i32
    %c0_i32_2 = arith.constant 0 : i32
    return %c0_i32, %c0_i32_0, %c0_i32_1 : i32, i32, i32
  }
  func.func @transform_2(%arg0: i32) -> (i32, i32) {
    %c0_i32 = arith.constant 0 : i32
    %c0_i32_0 = arith.constant 0 : i32
    %c0_i32_1 = arith.constant 0 : i32
    return %c0_i32, %c0_i32_0 : i32, i32
  }
  func.func @transform_3(%arg0: i32) -> (i32, i32) {
    %c0_i32 = arith.constant 0 : i32
    %c0_i32_0 = arith.constant 0 : i32
    return %arg0, %c0_i32 : i32, i32
  }
}

</mosaic_0001>

<bundles_post_ra>
// kernel: tpu_custom_call.1
= control target key start
LH: loop header
LB: loop body
LE: loop exit
PB: predicated region body
PF: predicated region fallthrough
CT: control target
= control target key end

     0   :  { %8 = vsyncpa [#allocation3], 0  ;;  %s6790_s0 = inlined_call_operand.hbm [shape: bf16[2048,128], index: 0, kind: input, shape index: {}, may-alias: {0,3}]   ;;  %s6791_s1 = inlined_call_operand.vmem [shape: bf16[3,128,32], index: 1, kind: input, shape index: {}]   ;;  %s6792_s2 = inlined_call_operand.vmem [shape: bf16[32,128], index: 2, kind: input, shape index: {}]   ;;  %s6793_s3 = inlined_call_operand.hbm [shape: bf16[2048,128], index: 3, kind: output, shape index: {}, may-alias: {0,3}]  }
   0x1   :  { %10 = vsyncpa [#allocation3 + $0x1], 0 }
   0x2   :  { %11 = vsyncpa [#allocation4], 0 }
   0x3   :  { %13 = vsyncpa [#allocation4 + $0x1], 0  ;;  %s5423_s12 = smov 0   ;;  %s5425_s13 = smov 0  }
   0x4   :  { %s5427_s14 = smov 0   ;;  %s5429_s15 = smov 0  }
   0x5 LB: > { %s5444_s16 = sadd.s32 4294967295, %s5395_s15   ;;  %s4177_s17 = sadd.s32 4294967294, %s5395_s15   ;;  %s5395_s15 = sphi %s5429_s15, %s7107_s15   ;;  %s5391_s14 = sphi %s5427_s14, %s7106_s14   ;;  %s5387_s13 = sphi %s5425_s13, %s7105_s13   ;;  %s5383_s12 = sphi %s5423_s12, %s7104_s12  }
   0x6   : > { %s5448_s18 = sadd.s32 1, %s5395_s15   ;;  %s26_s19 = sadd.s32 1, %s5391_s14 }
   0x7   : > { %s23_s20 = ssub.s32 %s5395_s15, %s5448_s18  ;;  %p33_p0 = scmp.ne.s32.totalorder %s5391_s14, %s5387_s13 }
   0x8   : > { %p24_p1 = scmp.eq.s32.totalorder %s23_s20, 0  ;;  %p34_p2 = scmp.eq.s32.totalorder %s5395_s15, 0 }
   0x9   : > { %p39_p3 = scmp.ne.s32.totalorder %s5387_s13, %s5383_s12  ;;  %p40_p4 = scmp.eq.s32.totalorder %s5444_s16, 0 }
   0xa   : > { %s5460_s21 = scalar_select %p24_p1, %s5391_s14, %s26_s19  }
   0xb   : > { %p5462_p5 = por %p34_p2, %p33_p0  ;;  %p5466_p6 = por %p40_p4, %p39_p3 }
   0xc   : > { %p105_p7 = scmp.eq.s32.totalorder %s5444_s16, 3  ;;  %p111_p8 = scmp.eq.s32.totalorder %s4177_s17, 3 }
   0xd   : > { %p5235_p9 = scmp.lt.s32.totalorder %s5395_s15, 4  ;;  %s137_s26 = sand.u32 1, %s5391_s14  }
   0xe   : > { %p5472_p10 = por %p105_p7, %p33_p0  ;;  %p5476_p11 = por %p111_p8, %p39_p3 }
   0xf   : > { %s4345_s27 = sshll.u32 %s5395_s15, 12  ;;  %s4180_s28 = sshll.u32 %s137_s26, 8 }
  0x10   : > { %s6926_s24 = scalar_select %p5472_p10, 1, 0 }
  0x11   : > { %s6927_s25 = scalar_select %p5476_p11, 1, 0 }
  0x12   : > { %s5485_s4 = scalar_lea.hbm %s6790_s0, %s4345_s27  ;;  %s141_s5 = scalar_lea.vmem [#allocation2], %s4180_s28 }
  0x13   : > { %s148_s6 = sshll.u32 %s141_s5, 4  ;;  %p5489_p12 = pnand %p5235_p9, %p5462_p5  ;;  %s5493_s6 = int_to_ptr.vmem [resolvable:$true] %s148_s6 }
  0x14   : > { %s5495_s8 = scalar_lea.sflag [#allocation3], %s137_s26  ;;  %s5299_s9 = scalar_lea.hbm %s5485_s4, 4096 }
  0x15   : > { %p5300_p13 = scmp.ne.s32.totalorder %s5485_s4, %s5299_s9  ;;  %p5301_p0 = pneg %p5489_p12 }
  0x16   : > { %s5304_s17 = scalar_lea.hbm %s6790_s0, 16384  ;;  %p5305_p3 = scmp.lt.u32.totalorder %s5485_s4, %s6790_s0 }
  0x17   : > { %p5302_p1 = pnand %p5301_p0, %p5300_p13  ;;  %p5306_p4 = scmp.lt.u32.totalorder %s5304_s17, %s5299_s9 }
  0x18   : > { %p5308_p7 = scmp.lt.u32.totalorder %s5299_s9, %s5485_s4 }
  0x19   : > { %p5303_p2 = pneg %p5302_p1  ;;  %p5307_p5 = por %p5306_p4, %p5305_p3 }
  0x1b   : > { %p5309_p8 = por %p5308_p7, %p5307_p5 }
  0x1d   : > { %p5310_p9 = pnand %p5309_p8, %p5303_p2 }
  0x1f   : > { %5313 = shalt.err (!%p5310_p9)
}
  0x20   : > { %s5314_s22 = scalar_lea.vmem %s5493_s6, 4096  ;;  %s5397_s26 = smov [#allocation2]  }
  0x21   : > { %p5315_p13 = scmp.ne.s32.totalorder %s5493_s6, %s5314_s22  ;;  %s5319_s27 = sshll.u32 %s5397_s26, 4  ;;  %s5320_s27 = int_to_ptr.vmem [resolvable:$false] %s5319_s27 }
  0x22   : > { %s5321_s28 = scalar_lea.vmem %s5320_s27, 8192  ;;  %p5322_p10 = scmp.lt.s32.totalorder %s5493_s6, %s5320_s27 }
  0x23   : > { %p5317_p1 = pnand %p5315_p13, %p5301_p0  ;;  %p5323_p3 = scmp.lt.s32.totalorder %s5321_s28, %s5314_s22 }
  0x25   : > { %p5318_p11 = pneg %p5317_p1  ;;  %p5324_p4 = por %p5323_p3, %p5322_p10 }
  0x27   : > { %p5325_p5 = pnand %p5324_p4, %p5318_p11 }
  0x29   : > { %5328 = shalt.err (!%p5325_p5)
}
  0x2a   : > { %s5398_s29 = smov 64   ;;  %s5399_s30 = smov 4  }
  0x2b   : > { %5230 = dma.hbm_to_vmem [thread:$0]  (!%p5489_p12), %s5485_s4, 4096, %s5493_s6, %s5495_s8, %s5398_s29, %s5398_s29, %s5399_s30  }
  0x2c   : > { %p4183_p0 = scmp.ge.s32.totalorder %s5395_s15, 1  ;;  %p156_p2 = scmp.lt.s32.totalorder %s5395_s15, 5 }
  0x2e   : > { %p157_p7 = pnand %p4183_p0, %p156_p2 }
  0x30   : > { %160 = sbr.rel (%p157_p7) target bundleno = 805 (0x325), region = 32 }
  0x37   : > { %s5526_s5 = sand.u32 1, %s5387_s13  }
  0x38   : > { %s4184_s9 = sshll.u32 %s5526_s5, 8  ;;  %s163_s10 = scalar_lea.sflag [#allocation3], %s5526_s5 }
  0x39   : > { %s5532_s11 = scalar_lea.vmem [#allocation2], %s4184_s9 }
  0x3a   : > { %5374 = dma.done.wait (%p5466_p6), %s163_s10, 4096  }
  0x3b   : > { %5376 = vsyncadd (%p5466_p6), %s163_s10, 4294963200  ;;  %v5273_v0 = vld [vmem:[%s6791_s1] sm:$0xff]   ;;  %v5275_v2 = vld [vmem:[%s6791_s1 + $0x8] sm:$0xff]   ;;  %vm3320_vm6 = vcmask 261120   ;;  %s6586_s20 = scalar_lea.vmem [#allocation5], %s4184_s9  ;;  %s4410_s9 = sshll.u32 %s5444_s16, 12 }
  0x3c   : > { %v5274_v1 = vld [vmem:[%s6791_s1 + $0x40] sm:$0xff]   ;;  %4915 = vmatprep.subr.bf16.mxu0 %v5273_v0  ;;  %v5276_v3 = vld [vmem:[%s6791_s1 + $0x48] sm:$0xff]   ;;  %v5277_v4 = vld [vmem:[%s6791_s1 + $0x10] sm:$0xff]   ;;  %s4104_s22 = sshll.u32 %s6586_s20, 4  ;;  %s6743_s16 = scalar_lea.hbm %s6793_s3, %s4410_s9  ;;  %s6745_s22 = int_to_ptr.vmem [resolvable:$true] %s4104_s22 }
  0x3d   : > { %4916 = vmatpush3.bf16.msra.mxu0 %v5273_v0  ;;  %4995 = vmatprep.subr.bf16.mxu1 %v5274_v1  ;;  %v5278_v5 = vld [vmem:[%s6791_s1 + $0x50] sm:$0xff]   ;;  %v5279_v6 = vld [vmem:[%s6791_s1 + $0x18] sm:$0xff]   ;;  %v5281_v8 = vld [vmem:[%s6791_s1 + $0x20] sm:$0xff]   ;;  %s4091_s27 = scalar_lea.sflag [#allocation4], %s5526_s5  ;;  %s5329_s28 = scalar_lea.vmem %s6745_s22, 4096 }
  0x3e   : > { %4917 = vmatprep.subr.bf16.mxu0 %v5275_v2  ;;  %4996 = vmatpush3.bf16.msra.mxu1 %v5274_v1  ;;  %v5280_v7 = vld [vmem:[%s6791_s1 + $0x58] sm:$0xff]   ;;  %v5282_v9 = vld [vmem:[%s6791_s1 + $0x60] sm:$0xff]   ;;  %v5283_v11 = vld [vmem:[%s6791_s1 + $0x28] sm:$0xff]   ;;  %p5330_p6 = scmp.ne.s32.totalorder %s6745_s22, %s5329_s28  ;;  %p7102_p10 = scmp.ne.s32.totalorder %s6926_s24, 0 }
  0x3f   : > { %4997 = vmatprep.subr.bf16.mxu1 %v5276_v3  ;;  %v5569_v10 = vld [vmem:[%s5532_s11] sm:$0xff]   ;;  %v5284_v14 = vld [vmem:[%s6791_s1 + $0x68] sm:$0xff]   ;;  %v5285_v18 = vld [vmem:[%s6791_s1 + $0x30] sm:$0xff]   ;;  %s5400_s29 = smov [#allocation5]  }
  0x40   : > { %6929 = vst [vmem:[#allocation8_spill] sm:$0xff] %v5569_v10  ;;  %v6842_v12 = vunpack.c.l.bf16 %v5569_v10  ;;  %v6841_v13 = vunpack.c.h.bf16 %v5569_v10  ;;  %v5584_v17 = vld [vmem:[%s5532_s11 + $0x8] sm:$0xff]   ;;  %v5286_v20 = vld [vmem:[%s6791_s1 + $0x70] sm:$0xff]   ;;  %v5287_v24 = vld [vmem:[%s6791_s1 + $0x38] sm:$0xff]   ;;  %p5331_p11 = pnand %p5330_p6, %p7102_p10  ;;  %s5333_s30 = sshll.u32 %s5400_s29, 4  ;;  %s5334_s30 = int_to_ptr.vmem [resolvable:$false] %s5333_s30 }
  0x41   : > { %4918 = vmatpush3.bf16.msra.mxu0 %v5275_v2  ;;  %6930 = vst [vmem:[#allocation9_spill] sm:$0xff] %v5584_v17  ;;  %v5595_v21 = vld [vmem:[%s5532_s11 + $0x10] sm:$0xff]   ;;  %v6846_v22 = vunpack.c.l.bf16 %v5584_v17  ;;  %v6845_v23 = vunpack.c.h.bf16 %v5584_v17  ;;  %v5288_v27 = vld [vmem:[%s6791_s1 + $0x78] sm:$0xff]   ;;  %v5289_v31 = vld [vmem:[%s6791_s1 + $0x80] sm:$0xff]   ;;  %s5335_s10 = scalar_lea.vmem %s5334_s30, 8192  ;;  %p5336_p8 = scmp.lt.s32.totalorder %s6745_s22, %s5334_s30 }
  0x42   : > { %4919 = vmatprep.subr.bf16.mxu0 %v5277_v4  ;;  %4998 = vmatpush3.bf16.msra.mxu1 %v5276_v3  ;;  %v320_v15 = vmax.f32 %v6842_v12, 0.0  ;;  %v321_v16 = vmax.f32 %v6841_v13, 0.0  ;;  %6931 = vst [vmem:[#allocation10_spill] sm:$0xff] %v5595_v21  ;;  %v6834_v25 = vunpack.c.l.bf16 %v5595_v21  ;;  %v6833_v26 = vunpack.c.h.bf16 %v5595_v21  ;;  %v5614_v30 = vld [vmem:[%s5532_s11 + $0x18] sm:$0xff]   ;;  %v5624_v34 = vld [vmem:[%s5532_s11 + $0x20] sm:$0xff]   ;;  %v5290_v41 = vld [vmem:[%s6791_s1 + $0x88] sm:$0xff]   ;;  %p5332_p12 = pneg %p5331_p11  ;;  %p5337_p9 = scmp.lt.s32.totalorder %s5335_s10, %s5329_s28 }
  0x43   : > { %4999 = vmatprep.subr.bf16.mxu1 %v5278_v5  ;;  %v322_v28 = vmax.f32 %v6846_v22, 0.0  ;;  %v323_v29 = vmax.f32 %v6845_v23, 0.0  ;;  %6932 = vst [vmem:[#allocation11_spill] sm:$0xff] %v5614_v30  ;;  %6933 = vst [vmem:[#allocation12_spill] sm:$0xff] %v5624_v34  ;;  %v6838_v36 = vunpack.c.l.bf16 %v5614_v30  ;;  %v6837_v37 = vunpack.c.h.bf16 %v5614_v30  ;;  %v5648_v46 = vld [vmem:[%s5532_s11 + $0x28] sm:$0xff]   ;;  %v5651_v47 = vld [vmem:[%s5532_s11 + $0x30] sm:$0xff]  }
  0x44   : > { %v5589_v19 = vpack.c.bf16 %v321_v16, %v320_v15  ;;  %v324_v32 = vmax.f32 %v6834_v25, 0.0  ;;  %v325_v33 = vmax.f32 %v6833_v26, 0.0  ;;  %v6826_v38 = vunpack.c.l.bf16 %v5624_v34  ;;  %6934 = vst [vmem:[#allocation13_spill] sm:$0xff] %v5648_v46  ;;  %6935 = vst [vmem:[#allocation14_spill] sm:$0xff] %v5651_v47  ;;  %v5291_v48 = vld [vmem:[%s6791_s1 + $0x90] sm:$0xff]   ;;  %v5292_v55 = vld [vmem:[%s6791_s1 + $0x98] sm:$0xff]   ;;  %p5338_p13 = por %p5337_p9, %p5336_p8 }
  0x45   : > { %4920 = vmatpush3.bf16.msra.mxu0 %v5277_v4  ;;  %v5626_v35 = vpack.c.bf16 %v323_v29, %v322_v28  ;;  %v6825_v39 = vunpack.c.h.bf16 %v5624_v34  ;;  %v326_v42 = vmax.f32 %v6838_v36, 0.0  ;;  %v327_v43 = vmax.f32 %v6837_v37, 0.0  ;;  %v5681_v60 = vld [vmem:[%s5532_s11 + $0x38] sm:$0xff]   ;;  %v5685_v61 = vld [vmem:[%s5532_s11 + $0x40] sm:$0xff]   ;;  %v5295_v15 = vld [vmem:[%s6791_s1 + $0xb0] sm:$0xff]  }
  0x46   : > { %4921 = vmatprep.subr.bf16.mxu0 %v5279_v6  ;;  %5000 = vmatpush3.bf16.msra.mxu1 %v5278_v5  ;;  %v5632_v40 = vpack.c.bf16 %v325_v33, %v324_v32  ;;  %v328_v44 = vmax.f32 %v6826_v38, 0.0  ;;  %v6830_v50 = vunpack.c.l.bf16 %v5648_v46  ;;  %v6829_v51 = vunpack.c.h.bf16 %v5648_v46  ;;  %6936 = vst [vmem:[#allocation15_spill] sm:$0xff] %v5681_v60  ;;  %6937 = vst [vmem:[#allocation16_spill] sm:$0xff] %v5685_v61  ;;  %v5293_v62 = vld [vmem:[%s6791_s1 + $0xa0] sm:$0xff]   ;;  %v5294_v5 = vld [vmem:[%s6791_s1 + $0xa8] sm:$0xff]   ;;  %p5339_p1 = pnand %p5338_p13, %p5332_p12 }
  0x47   : > { %5001 = vmatprep.subr.bf16.mxu1 %v5280_v7  ;;  %4931 = vmatprep.mubr.bf16.mxu0 %v5589_v19  ;;  %v329_v45 = vmax.f32 %v6825_v39, 0.0  ;;  %v5658_v49 = vpack.c.bf16 %v327_v43, %v326_v42  ;;  %v6818_v53 = vunpack.c.l.bf16 %v5651_v47  ;;  %v6817_v54 = vunpack.c.h.bf16 %v5651_v47  ;;  %v5296_v29 = vld [vmem:[%s6791_s1 + $0xb8] sm:$0xff]   ;;  %v5749_v43 = vld [vmem:[%s5532_s11 + $0x60] sm:$0xff]  }
  0x48   : > { %5011 = vmatprep.mubr.bf16.mxu1 %v5589_v19  ;;  %v330_v56 = vmax.f32 %v6830_v50, 0.0  ;;  %v331_v57 = vmax.f32 %v6829_v51, 0.0  ;;  %v6822_v0 = vunpack.c.l.bf16 %v5681_v60  ;;  %v6821_v1 = vunpack.c.h.bf16 %v5681_v60  ;;  %v5745_v42 = vld [vmem:[%s5532_s11 + $0x58] sm:$0xff]   ;;  %6941 = vst [vmem:[#allocation20_spill] sm:$0xff] %v5749_v43 }
  0x49   : > { %4922 = vmatpush3.bf16.msra.mxu0 %v5279_v6  ;;  %v5662_v52 = vpack.c.bf16 %v329_v45, %v328_v44  ;;  %v332_v58 = vmax.f32 %v6818_v53, 0.0  ;;  %v333_v59 = vmax.f32 %v6817_v54, 0.0  ;;  %v6810_v3 = vunpack.c.l.bf16 %v5685_v61  ;;  %6940 = vst [vmem:[#allocation19_spill] sm:$0xff] %v5745_v42 }
  0x4a   : > { %4923 = vmatprep.subr.bf16.mxu0 %v5281_v8  ;;  %5002 = vmatpush3.bf16.msra.mxu1 %v5280_v7  ;;  %v5690_v63 = vpack.c.bf16 %v331_v57, %v330_v56  ;;  %v6809_v4 = vunpack.c.h.bf16 %v5685_v61  ;;  %v334_v6 = vmax.f32 %v6822_v0, 0.0  ;;  %v335_v7 = vmax.f32 %v6821_v1, 0.0 }
  0x4b   : > { %5003 = vmatprep.subr.bf16.mxu1 %v5282_v9  ;;  %v5694_v2 = vpack.c.bf16 %v333_v59, %v332_v58  ;;  %v6806_v45 = vunpack.c.l.bf16 %v5745_v42  ;;  %v6796_v56 = vunpack.c.l.bf16 %v5749_v43  ;;  %v6795_v57 = vunpack.c.h.bf16 %v5749_v43 }
  0x4c   : > { %v5722_v16 = vpack.c.bf16 %v335_v7, %v334_v6  ;;  %v5771_v6 = vld [vmem:[%s5532_s11 + $0x68] sm:$0xff]   ;;  %v5775_v7 = vld [vmem:[%s5532_s11 + $0x70] sm:$0xff]  }
  0x4d   : > { %4924 = vmatpush3.bf16.msra.mxu0 %v5281_v8  ;;  %v336_v8 = vmax.f32 %v6810_v3, 0.0  ;;  %v342_v58 = vmax.f32 %v6806_v45, 0.0  ;;  %6942 = vst [vmem:[#allocation21_spill] sm:$0xff] %v5771_v6  ;;  %6943 = vst [vmem:[#allocation22_spill] sm:$0xff] %v5775_v7 }
  0x4e   : > { %4925 = vmatprep.subr.bf16.mxu0 %v5283_v11  ;;  %5004 = vmatpush3.bf16.msra.mxu1 %v5282_v9  ;;  %v337_v9 = vmax.f32 %v6809_v4, 0.0 }
  0x4f   : > { %5005 = vmatprep.subr.bf16.mxu1 %v5284_v14 }
  0x51   : > { %4926 = vmatpush3.bf16.msra.mxu0 %v5283_v11  ;;  %v5713_v11 = vld [vmem:[%s5532_s11 + $0x48] sm:$0xff]  }
  0x52   : > { %4927 = vmatprep.subr.bf16.mxu0 %v5285_v18  ;;  %5006 = vmatpush3.bf16.msra.mxu1 %v5284_v14  ;;  %6938 = vst [vmem:[#allocation17_spill] sm:$0xff] %v5713_v11  ;;  %v5717_v14 = vld [vmem:[%s5532_s11 + $0x50] sm:$0xff]  }
  0x53   : > { %5007 = vmatprep.subr.bf16.mxu1 %v5286_v20  ;;  %6939 = vst [vmem:[#allocation18_spill] sm:$0xff] %v5717_v14  ;;  %v6801_v28 = vunpack.c.h.bf16 %v5717_v14 }
  0x55   : > { %4928 = vmatpush3.bf16.msra.mxu0 %v5285_v18  ;;  %v6814_v18 = vunpack.c.l.bf16 %v5713_v11 }
  0x56   : > { %4929 = vmatprep.subr.bf16.mxu0 %v5287_v24  ;;  %5008 = vmatpush3.bf16.msra.mxu1 %v5286_v20  ;;  %v6813_v20 = vunpack.c.h.bf16 %v5713_v11 }
  0x57   : > { %5009 = vmatprep.subr.bf16.mxu1 %v5288_v27 }
  0x58   : > { %v339_v32 = vmax.f32 %v6813_v20, 0.0 }
  0x59   : > { %4930 = vmatpush3.bf16.msra.mxu0 %v5287_v24  ;;  %v5726_v24 = vpack.c.bf16 %v337_v9, %v336_v8  ;;  %v6798_v9 = vunpack.c.l.bf16 %v5771_v6 }
  0x5a   : > { %5010 = vmatpush3.bf16.msra.mxu1 %v5288_v27  ;;  %5075 = vmatprep.subr.bf16.mxu0 %v5289_v31  ;;  %v6802_v27 = vunpack.c.l.bf16 %v5717_v14 }
  0x5c   : > { %4932 = vmatmul.mubr.bf16.vlgmr.msra.gmra.mrb[0].mxu0 %v5626_v35  ;;  %v340_v33 = vmax.f32 %v6802_v27, 0.0 }
  0x5d   : > { %5076 = vmatpush3.bf16.msra.mxu0 %v5289_v31  ;;  %5012 = vmatmul.mubr.bf16.vlgmr.msra.gmra.mrb[0].mxu1 %v5626_v35  ;;  %v338_v31 = vmax.f32 %v6814_v18, 0.0 }
  0x5e   : > { %4935 = vmatprep.mubr.bf16.mxu0 %v5632_v40  ;;  %5015 = vmatprep.mubr.bf16.mxu1 %v5632_v40 }
  0x5f   : > { %5077 = vmatprep.subr.bf16.mxu0 %v5290_v41  ;;  %v5751_v44 = vpack.c.bf16 %v339_v32, %v338_v31  ;;  %v6799_v31 = vunpack.c.l.bf16 %v5775_v7  ;;  %v6800_v32 = vunpack.c.h.bf16 %v5775_v7 }
  0x61   : > { %5078 = vmatpush3.bf16.msra.mxu0 %v5290_v41  ;;  %v341_v41 = vmax.f32 %v6801_v28, 0.0 }
  0x62   : > { %5079 = vmatprep.subr.bf16.mxu0 %v5291_v48 }
  0x64   : > { %4936 = vmatmul.mubr.bf16.gmra.mrb[4].mxu0 %v5658_v49 }
  0x65   : > { %5016 = vmatmul.mubr.bf16.gmra.mrb[4].mxu1 %v5658_v49  ;;  %4939 = vmatprep.mubr.bf16.mxu0 %v5662_v52 }
  0x66   : > { %5019 = vmatprep.mubr.bf16.mxu1 %v5662_v52  ;;  %5080 = vmatpush3.bf16.msra.mxu0 %v5291_v48  ;;  %v6805_v48 = vunpack.c.h.bf16 %v5745_v42 }
  0x67   : > { %5081 = vmatprep.subr.bf16.mxu0 %v5292_v55 }
  0x68   : > { %v343_v59 = vmax.f32 %v6805_v48, 0.0 }
  0x6a   : > { %5082 = vmatpush3.bf16.msra.mxu0 %v5292_v55  ;;  %v5755_v55 = vpack.c.bf16 %v341_v41, %v340_v33  ;;  %v5777_v8 = vpack.c.bf16 %v343_v59, %v342_v58  ;;  %v346_v33 = vmax.f32 %v6798_v9, 0.0  ;;  %v348_v58 = vmax.f32 %v6799_v31, 0.0 }
  0x6b   : > { %5083 = vmatprep.subr.bf16.mxu0 %v5293_v62  ;;  %v349_v59 = vmax.f32 %v6800_v32, 0.0 }
  0x6c   : > { %4940 = vmatmul.mubr.bf16.gmra.mrb[8].mxu0 %v5690_v63 }
  0x6d   : > { %5020 = vmatmul.mubr.bf16.gmra.mrb[8].mxu1 %v5690_v63  ;;  %4943 = vmatprep.mubr.bf16.mxu0 %v5694_v2  ;;  %v5807_v9 = vpack.c.bf16 %v349_v59, %v348_v58  ;;  %v5823_v58 = vld [vmem:[%s5532_s11 + $0x88] sm:$0xff]   ;;  %v5827_v59 = vld [vmem:[%s5532_s11 + $0x90] sm:$0xff]  }
  0x6e   : > { %5023 = vmatprep.mubr.bf16.mxu1 %v5694_v2  ;;  %5084 = vmatpush3.bf16.msra.mxu0 %v5293_v62  ;;  %v344_v62 = vmax.f32 %v6796_v56, 0.0  ;;  %6946 = vst [vmem:[#allocation25_spill] sm:$0xff] %v5823_v58  ;;  %6947 = vst [vmem:[#allocation26_spill] sm:$0xff] %v5827_v59  ;;  %v6812_v48 = vunpack.c.h.bf16 %v5823_v58 }
  0x6f   : > { %5085 = vmatprep.subr.bf16.mxu0 %v5294_v5 }
  0x70   : > { %v355_v3 = vmax.f32 %v6812_v48, 0.0 }
  0x72   : > { %5086 = vmatpush3.bf16.msra.mxu0 %v5294_v5  ;;  %v345_v5 = vmax.f32 %v6795_v57, 0.0 }
  0x73   : > { %5087 = vmatprep.subr.bf16.mxu0 %v5295_v15 }
  0x74   : > { %4944 = vmatmul.mubr.bf16.gmra.mrb[12].mxu0 %v5722_v16 }
  0x75   : > { %5024 = vmatmul.mubr.bf16.gmra.mrb[12].mxu1 %v5722_v16  ;;  %4947 = vmatprep.mubr.bf16.mxu0 %v5726_v24 }
  0x76   : > { %5027 = vmatprep.mubr.bf16.mxu1 %v5726_v24  ;;  %5088 = vmatpush3.bf16.msra.mxu0 %v5295_v15  ;;  %v6797_v15 = vunpack.c.h.bf16 %v5771_v6 }
  0x77   : > { %5089 = vmatprep.subr.bf16.mxu0 %v5296_v29 }
  0x78   : > { %v347_v41 = vmax.f32 %v6797_v15, 0.0 }
  0x7a   : > { %5090 = vmatpush3.bf16.msra.mxu0 %v5296_v29  ;;  %v5781_v29 = vpack.c.bf16 %v345_v5, %v344_v62  ;;  %v5797_v62 = vld [vmem:[%s5532_s11 + $0x78] sm:$0xff]   ;;  %v5801_v5 = vld [vmem:[%s5532_s11 + $0x80] sm:$0xff]   ;;  %v5803_v57 = vpack.c.bf16 %v347_v41, %v346_v33 }
  0x7b   : > { %6944 = vst [vmem:[#allocation23_spill] sm:$0xff] %v5797_v62  ;;  %6945 = vst [vmem:[#allocation24_spill] sm:$0xff] %v5801_v5  ;;  %v6803_v56 = vunpack.c.l.bf16 %v5797_v62  ;;  %v6804_v15 = vunpack.c.h.bf16 %v5797_v62  ;;  %v6807_v31 = vunpack.c.l.bf16 %v5801_v5  ;;  %v6808_v32 = vunpack.c.h.bf16 %v5801_v5 }
  0x7c   : > { %4948 = vmatmul.mubr.bf16.gmra.mrb[16].mxu0 %v5751_v44 }
  0x7d   : > { %5028 = vmatmul.mubr.bf16.gmra.mrb[16].mxu1 %v5751_v44  ;;  %4951 = vmatprep.mubr.bf16.mxu0 %v5755_v55  ;;  %v350_v28 = vmax.f32 %v6803_v56, 0.0  ;;  %v351_v27 = vmax.f32 %v6804_v15, 0.0  ;;  %v352_v33 = vmax.f32 %v6807_v31, 0.0  ;;  %v353_v41 = vmax.f32 %v6808_v32, 0.0 }
  0x7e   : > { %5031 = vmatprep.mubr.bf16.mxu1 %v5755_v55  ;;  %v6811_v15 = vunpack.c.l.bf16 %v5823_v58  ;;  %v6815_v31 = vunpack.c.l.bf16 %v5827_v59  ;;  %v6816_v32 = vunpack.c.h.bf16 %v5827_v59 }
  0x7f   : > { %v5829_v56 = vpack.c.bf16 %v351_v27, %v350_v28  ;;  %v5833_v45 = vpack.c.bf16 %v353_v41, %v352_v33  ;;  %v5849_v33 = vld [vmem:[%s5532_s11 + $0x98] sm:$0xff]   ;;  %v5853_v41 = vld [vmem:[%s5532_s11 + $0xa0] sm:$0xff]  }
  0x80   : > { %v354_v4 = vmax.f32 %v6811_v15, 0.0  ;;  %v356_v27 = vmax.f32 %v6815_v31, 0.0  ;;  %v357_v28 = vmax.f32 %v6816_v32, 0.0  ;;  %6948 = vst [vmem:[#allocation27_spill] sm:$0xff] %v5849_v33  ;;  %6949 = vst [vmem:[#allocation28_spill] sm:$0xff] %v5853_v41  ;;  %v6819_v48 = vunpack.c.l.bf16 %v5849_v33 }
  0x81   : > { %v6820_v20 = vunpack.c.h.bf16 %v5849_v33  ;;  %v6823_v31 = vunpack.c.l.bf16 %v5853_v41  ;;  %v6824_v32 = vunpack.c.h.bf16 %v5853_v41 }
  0x82   : > { %v5855_v15 = vpack.c.bf16 %v355_v3, %v354_v4  ;;  %v5859_v18 = vpack.c.bf16 %v357_v28, %v356_v27  ;;  %v358_v54 = vmax.f32 %v6819_v48, 0.0  ;;  %v5875_v27 = vld [vmem:[%s5532_s11 + $0xa8] sm:$0xff]   ;;  %v5879_v28 = vld [vmem:[%s5532_s11 + $0xb0] sm:$0xff]  }
  0x83   : > { %v359_v53 = vmax.f32 %v6820_v20, 0.0  ;;  %v360_v3 = vmax.f32 %v6823_v31, 0.0  ;;  %v361_v4 = vmax.f32 %v6824_v32, 0.0  ;;  %6950 = vst [vmem:[#allocation29_spill] sm:$0xff] %v5875_v27  ;;  %6951 = vst [vmem:[#allocation30_spill] sm:$0xff] %v5879_v28  ;;  %v6827_v20 = vunpack.c.l.bf16 %v5875_v27 }
  0x84   : > { %4952 = vmatmul.mubr.bf16.gmra.mrb[20].mxu0 %v5777_v8  ;;  %v6828_v1 = vunpack.c.h.bf16 %v5875_v27  ;;  %v6831_v31 = vunpack.c.l.bf16 %v5879_v28  ;;  %v6832_v32 = vunpack.c.h.bf16 %v5879_v28 }
  0x85   : > { %5032 = vmatmul.mubr.bf16.gmra.mrb[20].mxu1 %v5777_v8  ;;  %4955 = vmatprep.mubr.bf16.mxu0 %v5781_v29  ;;  %v5881_v48 = vpack.c.bf16 %v359_v53, %v358_v54  ;;  %v5885_v0 = vpack.c.bf16 %v361_v4, %v360_v3  ;;  %v362_v39 = vmax.f32 %v6827_v20, 0.0  ;;  %v5901_v3 = vld [vmem:[%s5532_s11 + $0xb8] sm:$0xff]   ;;  %v5905_v4 = vld [vmem:[%s5532_s11 + $0xc0] sm:$0xff]  }
  0x86   : > { %5035 = vmatprep.mubr.bf16.mxu1 %v5781_v29  ;;  %v363_v38 = vmax.f32 %v6828_v1, 0.0  ;;  %v364_v53 = vmax.f32 %v6831_v31, 0.0  ;;  %v365_v54 = vmax.f32 %v6832_v32, 0.0  ;;  %6952 = vst [vmem:[#allocation31_spill] sm:$0xff] %v5901_v3  ;;  %6953 = vst [vmem:[#allocation32_spill] sm:$0xff] %v5905_v4  ;;  %v6835_v1 = vunpack.c.l.bf16 %v5901_v3 }
  0x87   : > { %v6836_v51 = vunpack.c.h.bf16 %v5901_v3  ;;  %v6839_v31 = vunpack.c.l.bf16 %v5905_v4  ;;  %v6840_v32 = vunpack.c.h.bf16 %v5905_v4 }
  0x88   : > { %v5907_v20 = vpack.c.bf16 %v363_v38, %v362_v39  ;;  %v5911_v50 = vpack.c.bf16 %v365_v54, %v364_v53  ;;  %v366_v26 = vmax.f32 %v6835_v1, 0.0  ;;  %v5927_v53 = vld [vmem:[%s5532_s11 + $0xc8] sm:$0xff]   ;;  %v5931_v54 = vld [vmem:[%s5532_s11 + $0xd0] sm:$0xff]  }
  0x89   : > { %v367_v25 = vmax.f32 %v6836_v51, 0.0  ;;  %v368_v38 = vmax.f32 %v6839_v31, 0.0  ;;  %v369_v39 = vmax.f32 %v6840_v32, 0.0  ;;  %6954 = vst [vmem:[#allocation33_spill] sm:$0xff] %v5927_v53  ;;  %6955 = vst [vmem:[#allocation34_spill] sm:$0xff] %v5931_v54  ;;  %v6843_v51 = vunpack.c.l.bf16 %v5927_v53 }
  0x8a   : > { %v6844_v37 = vunpack.c.h.bf16 %v5927_v53  ;;  %v6847_v31 = vunpack.c.l.bf16 %v5931_v54  ;;  %v6848_v32 = vunpack.c.h.bf16 %v5931_v54 }
  0x8b   : > { %v5933_v1 = vpack.c.bf16 %v367_v25, %v366_v26  ;;  %v5937_v36 = vpack.c.bf16 %v369_v39, %v368_v38  ;;  %v370_v13 = vmax.f32 %v6843_v51, 0.0  ;;  %v5953_v38 = vld [vmem:[%s5532_s11 + $0xd8] sm:$0xff]   ;;  %v5957_v39 = vld [vmem:[%s5532_s11 + $0xe0] sm:$0xff]  }
  0x8c   : > { %4956 = vmatmul.mubr.bf16.gmra.mrb[24].mxu0 %v5803_v57  ;;  %v371_v12 = vmax.f32 %v6844_v37, 0.0  ;;  %v372_v25 = vmax.f32 %v6847_v31, 0.0  ;;  %v373_v26 = vmax.f32 %v6848_v32, 0.0  ;;  %6956 = vst [vmem:[#allocation35_spill] sm:$0xff] %v5953_v38  ;;  %6957 = vst [vmem:[#allocation36_spill] sm:$0xff] %v5957_v39  ;;  %v6853_v37 = vunpack.c.l.bf16 %v5953_v38 }
  0x8d   : > { %5036 = vmatmul.mubr.bf16.gmra.mrb[24].mxu1 %v5803_v57  ;;  %4959 = vmatprep.mubr.bf16.mxu0 %v5807_v9  ;;  %v6854_v23 = vunpack.c.h.bf16 %v5953_v38  ;;  %v6859_v31 = vunpack.c.l.bf16 %v5957_v39  ;;  %v6862_v32 = vunpack.c.h.bf16 %v5957_v39 }
  0x8e   : > { %5039 = vmatprep.mubr.bf16.mxu1 %v5807_v9  ;;  %v5959_v51 = vpack.c.bf16 %v371_v12, %v370_v13  ;;  %v5963_v22 = vpack.c.bf16 %v373_v26, %v372_v25  ;;  %v374_v54 = vmax.f32 %v6853_v37, 0.0  ;;  %v5979_v25 = vld [vmem:[%s5532_s11 + $0xe8] sm:$0xff]   ;;  %v5983_v26 = vld [vmem:[%s5532_s11 + $0xf0] sm:$0xff]  }
  0x8f   : > { %v375_v4 = vmax.f32 %v6854_v23, 0.0  ;;  %v376_v12 = vmax.f32 %v6859_v31, 0.0  ;;  %v377_v13 = vmax.f32 %v6862_v32, 0.0  ;;  %6958 = vst [vmem:[#allocation37_spill] sm:$0xff] %v5979_v25  ;;  %6959 = vst [vmem:[#allocation38_spill] sm:$0xff] %v5983_v26  ;;  %v6865_v23 = vunpack.c.l.bf16 %v5979_v25 }
  0x90   : > { %v6866_v38 = vunpack.c.h.bf16 %v5979_v25  ;;  %v6872_v31 = vunpack.c.l.bf16 %v5983_v26  ;;  %v6871_v39 = vunpack.c.h.bf16 %v5983_v26 }
  0x91   : > { %v5985_v37 = vpack.c.bf16 %v375_v4, %v374_v54  ;;  %v5989_v53 = vpack.c.bf16 %v377_v13, %v376_v12  ;;  %v378_v32 = vmax.f32 %v6865_v23, 0.0  ;;  %v6005_v12 = vld [vmem:[%s5532_s11 + $0xf8] sm:$0xff]   ;;  %v5297_v13 = vld [vmem:[%s6792_s2] sm:$0xff]  }
  0x92   : > { %v379_v28 = vmax.f32 %v6866_v38, 0.0  ;;  %v380_v4 = vmax.f32 %v6872_v31, 0.0  ;;  %v381_v54 = vmax.f32 %v6871_v39, 0.0  ;;  %6960 = vst [vmem:[#allocation39_spill] sm:$0xff] %v6005_v12  ;;  %v6874_v38 = vunpack.c.l.bf16 %v6005_v12  ;;  %5155 = vmatprep.subr.bf16.mxu1 %v5297_v13 }
  0x93   : > { %v6873_v25 = vunpack.c.h.bf16 %v6005_v12  ;;  %5156 = vmatpush3.bf16.msra.mxu1 %v5297_v13 }
  0x94   : > { %4960 = vmatmul.mubr.bf16.gmra.mrb[28].mxu0 %v5829_v56  ;;  %v6011_v23 = vpack.c.bf16 %v379_v28, %v378_v32  ;;  %v6015_v3 = vpack.c.bf16 %v381_v54, %v380_v4  ;;  %v382_v39 = vmax.f32 %v6874_v38, 0.0 }
  0x95   : > { %5040 = vmatmul.mubr.bf16.gmra.mrb[28].mxu1 %v5829_v56  ;;  %4963 = vmatprep.mubr.bf16.mxu0 %v5833_v45  ;;  %v383_v31 = vmax.f32 %v6873_v25, 0.0 }
  0x96   : > { %5043 = vmatprep.mubr.bf16.mxu1 %v5833_v45 }
  0x97   : > { %v6025_v32 = vpack.c.bf16 %v383_v31, %v382_v39 }
  0x9c   : > { %4964 = vmatmul.mubr.bf16.gmra.mrb[32].mxu0 %v5855_v15 }
  0x9d   : > { %5044 = vmatmul.mubr.bf16.gmra.mrb[32].mxu1 %v5855_v15  ;;  %4967 = vmatprep.mubr.bf16.mxu0 %v5859_v18 }
  0x9e   : > { %5047 = vmatprep.mubr.bf16.mxu1 %v5859_v18 }
  0xa4   : > { %4968 = vmatmul.mubr.bf16.gmra.mrb[36].mxu0 %v5881_v48 }
  0xa5   : > { %5048 = vmatmul.mubr.bf16.gmra.mrb[36].mxu1 %v5881_v48  ;;  %4971 = vmatprep.mubr.bf16.mxu0 %v5885_v0 }
  0xa6   : > { %5051 = vmatprep.mubr.bf16.mxu1 %v5885_v0 }
  0xac   : > { %4972 = vmatmul.mubr.bf16.gmra.mrb[40].mxu0 %v5907_v20 }
  0xad   : > { %5052 = vmatmul.mubr.bf16.gmra.mrb[40].mxu1 %v5907_v20  ;;  %4975 = vmatprep.mubr.bf16.mxu0 %v5911_v50 }
  0xae   : > { %5055 = vmatprep.mubr.bf16.mxu1 %v5911_v50 }
  0xb4   : > { %4976 = vmatmul.mubr.bf16.gmra.mrb[44].mxu0 %v5933_v1 }
  0xb5   : > { %5056 = vmatmul.mubr.bf16.gmra.mrb[44].mxu1 %v5933_v1  ;;  %4979 = vmatprep.mubr.bf16.mxu0 %v5937_v36 }
  0xb6   : > { %5059 = vmatprep.mubr.bf16.mxu1 %v5937_v36 }
  0xbc   : > { %4980 = vmatmul.mubr.bf16.gmra.mrb[48].mxu0 %v5959_v51 }
  0xbd   : > { %5060 = vmatmul.mubr.bf16.gmra.mrb[48].mxu1 %v5959_v51  ;;  %4983 = vmatprep.mubr.bf16.mxu0 %v5963_v22 }
  0xbe   : > { %5063 = vmatprep.mubr.bf16.mxu1 %v5963_v22 }
  0xc4   : > { %4984 = vmatmul.mubr.bf16.gmra.mrb[52].mxu0 %v5985_v37 }
  0xc5   : > { %5064 = vmatmul.mubr.bf16.gmra.mrb[52].mxu1 %v5985_v37  ;;  %4987 = vmatprep.mubr.bf16.mxu0 %v5989_v53 }
  0xc6   : > { %5067 = vmatprep.mubr.bf16.mxu1 %v5989_v53 }
  0xcc   : > { %4988 = vmatmul.mubr.bf16.gmra.mrb[56].mxu0 %v6011_v23 }
  0xcd   : > { %5068 = vmatmul.mubr.bf16.gmra.mrb[56].mxu1 %v6011_v23  ;;  %4991 = vmatprep.mubr.bf16.mxu0 %v6015_v3 }
  0xce   : > { %5071 = vmatprep.mubr.bf16.mxu1 %v6015_v3 }
  0xd4   : > { %4992 = vmatmul.mubr.bf16.gmra.mrb[60].mxu0 %v6025_v32 }
  0xd5   : > { %5072 = vmatmul.mubr.bf16.gmra.mrb[60].mxu1 %v6025_v32  ;;  %5091 = vmatprep.mubr.bf16.mxu0 %v5589_v19  ;;  %v5298_v19 = vld [vmem:[%s6792_s2 + $0x8] sm:$0xff]  }
  0xd6   : > { %5157 = vmatprep.subr.bf16.mxu1 %v5298_v19 }
  0xd7   : > { %5158 = vmatpush3.bf16.msra.mxu1 %v5298_v19 }
  0xdc   : > { %5092 = vmatmul.mubr.bf16.vlgmr.msra.gmra.mrb[64].mxu0 %v5626_v35  ;;  %v416_v35 = vlaneseq }
  0xdd   : > { %5095 = vmatprep.mubr.bf16.mxu0 %v5632_v40 }
  0xde   : > { %v6054_v40 = vshrl.u32 %v416_v35, 7 }
  0xe0   : > { %vm2438_vm0 = vcmp.lt.s32.totalorder %v6054_v40, 1  ;;  %v449_v5 = vadd.s32 256, %v6054_v40  ;;  %v465_v10 = vadd.s32 384, %v6054_v40  ;;  %vm2887_vm5 = vcmp.lt.s32.totalorder %v6054_v40, 7 }
  0xe4   : > { %5096 = vmatmul.mubr.bf16.gmra.mrb[68].mxu0 %v5658_v49 }
  0xe5   : > { %5099 = vmatprep.mubr.bf16.mxu0 %v5662_v52 }
  0xec   : > { %5100 = vmatmul.mubr.bf16.gmra.mrb[72].mxu0 %v5690_v63 }
  0xed   : > { %5103 = vmatprep.mubr.bf16.mxu0 %v5694_v2 }
  0xf4   : > { %5104 = vmatmul.mubr.bf16.gmra.mrb[76].mxu0 %v5722_v16 }
  0xf5   : > { %5107 = vmatprep.mubr.bf16.mxu0 %v5726_v24 }
  0xfc   : > { %5108 = vmatmul.mubr.bf16.gmra.mrb[80].mxu0 %v5751_v44 }
  0xfd   : > { %5111 = vmatprep.mubr.bf16.mxu0 %v5755_v55 }
 0x104   : > { %5112 = vmatmul.mubr.bf16.gmra.mrb[84].mxu0 %v5777_v8 }
 0x105   : > { %5115 = vmatprep.mubr.bf16.mxu0 %v5781_v29 }
 0x10c   : > { %5116 = vmatmul.mubr.bf16.gmra.mrb[88].mxu0 %v5803_v57 }
 0x10d   : > { %5119 = vmatprep.mubr.bf16.mxu0 %v5807_v9 }
 0x114   : > { %5120 = vmatmul.mubr.bf16.gmra.mrb[92].mxu0 %v5829_v56 }
 0x115   : > { %5123 = vmatprep.mubr.bf16.mxu0 %v5833_v45 }
 0x11c   : > { %5124 = vmatmul.mubr.bf16.gmra.mrb[96].mxu0 %v5855_v15 }
 0x11d   : > { %5127 = vmatprep.mubr.bf16.mxu0 %v5859_v18 }
 0x124   : > { %5128 = vmatmul.mubr.bf16.gmra.mrb[100].mxu0 %v5881_v48 }
 0x125   : > { %5131 = vmatprep.mubr.bf16.mxu0 %v5885_v0 }
 0x12c   : > { %5132 = vmatmul.mubr.bf16.gmra.mrb[104].mxu0 %v5907_v20 }
 0x12d   : > { %5135 = vmatprep.mubr.bf16.mxu0 %v5911_v50 }
 0x12f   : > { %v4933_v49 = vpop.f32.mrb[0].mxu0 }
 0x130   : > { %v6057_v52 = vpop.f32.mrb[1].mxu0  ;;  %v5013_v63 = vpop.f32.mrb[0].mxu1  ;;  %v2376_v18 = vrot.slane %v4933_v49, 7 }
 0x131   : > { %v4934_v2 = vpop.f32.mrb[2].mxu0  ;;  %v6060_v16 = vpop.f32.mrb[1].mxu1  ;;  %v6875_v45 = vrot.slane %v6057_v52, 7 }
 0x132   : > { %v2377_v24 = vrot.slane %v4934_v2, 7  ;;  %v1350_v44 = vpop.f32.mrb[3].mxu0  ;;  %v5014_v0 = vpop.f32.mrb[2].mxu1 }
 0x133   : > { %v2375_v20 = vrot.slane %v1350_v44, 7  ;;  %v1704_v48 = vpop.f32.mrb[3].mxu1 }
 0x134   : > { %v2499_v50 = vsel %vm2438_vm0, %v2376_v18, %v2377_v24  ;;  %5136 = vmatmul.mubr.bf16.gmra.mrb[108].mxu0 %v5933_v1 }
 0x135   : > { %v2500_v55 = vsel %vm2438_vm0, %v2375_v20, %v2376_v18  ;;  %v6068_v56 = vadd.f32 %v5014_v0, %v2499_v50  ;;  %v2501_v57 = vsel %vm2438_vm0, %v6875_v45, %v2375_v20  ;;  %5139 = vmatprep.mubr.bf16.mxu0 %v5937_v36 }
 0x136   : > { %v6075_v8 = vadd.f32 %v5013_v63, %v2500_v55  ;;  %v6077_v9 = vadd.f32 %v2501_v57, %v1704_v48 }
 0x137   : > { %v4937_v15 = vpop.f32.mrb[4].mxu0 }
 0x138   : > { %v1363_v29 = vpop.f32.mrb[5].mxu0  ;;  %v5017_v31 = vpop.f32.mrb[4].mxu1  ;;  %v2380_v4 = vrot.slane %v4937_v15, 7 }
 0x139   : > { %v2378_v1 = vrot.slane %v1363_v29, 7  ;;  %v4938_v28 = vpop.f32.mrb[6].mxu0  ;;  %v1717_v39 = vpop.f32.mrb[5].mxu1 }
 0x13a   : > { %v2381_v54 = vrot.slane %v4938_v28, 7  ;;  %v1366_v13 = vpop.f32.mrb[7].mxu0  ;;  %v5018_v19 = vpop.f32.mrb[6].mxu1 }
 0x13b   : > { %v2379_v35 = vrot.slane %v1366_v13, 7  ;;  %v2498_v49 = vsel %vm2438_vm0, %v2377_v24, %v2378_v1  ;;  %v1720_v2 = vpop.f32.mrb[7].mxu1 }
 0x13c   : > { %v6081_v36 = vadd.f32 %v2498_v49, %v1717_v39  ;;  %v2495_v63 = vsel %vm2438_vm0, %v2380_v4, %v2381_v54  ;;  %5140 = vmatmul.mubr.bf16.gmra.mrb[112].mxu0 %v5959_v51 }
 0x13d   : > { %v2496_v18 = vsel %vm2438_vm0, %v2379_v35, %v2380_v4  ;;  %v6088_v44 = vadd.f32 %v5018_v19, %v2495_v63  ;;  %v2497_v0 = vsel %vm2438_vm0, %v2378_v1, %v2379_v35  ;;  %5143 = vmatprep.mubr.bf16.mxu0 %v5963_v22 }
 0x13e   : > { %v6093_v20 = vadd.f32 %v5017_v31, %v2496_v18  ;;  %v6095_v24 = vadd.f32 %v2497_v0, %v1720_v2 }
 0x13f   : > { %v4941_v48 = vpop.f32.mrb[8].mxu0 }
 0x140   : > { %v1379_v50 = vpop.f32.mrb[9].mxu0  ;;  %v5021_v55 = vpop.f32.mrb[8].mxu1  ;;  %v2384_v29 = vrot.slane %v4941_v48, 7 }
 0x141   : > { %v2382_v57 = vrot.slane %v1379_v50, 7  ;;  %v4942_v15 = vpop.f32.mrb[10].mxu0  ;;  %v1733_v51 = vpop.f32.mrb[9].mxu1 }
 0x142   : > { %v2385_v28 = vrot.slane %v4942_v15, 7  ;;  %v1382_v39 = vpop.f32.mrb[11].mxu0  ;;  %v5022_v4 = vpop.f32.mrb[10].mxu1 }
 0x143   : > { %v2383_v13 = vrot.slane %v1382_v39, 7  ;;  %v2494_v1 = vsel %vm2438_vm0, %v2381_v54, %v2382_v57  ;;  %v1736_v19 = vpop.f32.mrb[11].mxu1 }
 0x144   : > { %v6099_v22 = vadd.f32 %v2494_v1, %v1733_v51  ;;  %v2491_v31 = vsel %vm2438_vm0, %v2384_v29, %v2385_v28  ;;  %5144 = vmatmul.mubr.bf16.gmra.mrb[116].mxu0 %v5985_v37  ;;  %v433_v51 = vadd.s32 128, %v6054_v40 }
 0x145   : > { %v2492_v35 = vsel %vm2438_vm0, %v2383_v13, %v2384_v29  ;;  %v6106_v49 = vadd.f32 %v5022_v4, %v2491_v31  ;;  %v2493_v2 = vsel %vm2438_vm0, %v2382_v57, %v2383_v13  ;;  %5147 = vmatprep.mubr.bf16.mxu0 %v5989_v53 }
 0x146   : > { %v6111_v63 = vadd.f32 %v5021_v55, %v2492_v35  ;;  %v6113_v54 = vadd.f32 %v2493_v2, %v1736_v19 }
 0x147   : > { %v4945_v18 = vpop.f32.mrb[12].mxu0 }
 0x148   : > { %v1395_v0 = vpop.f32.mrb[13].mxu0  ;;  %v5025_v48 = vpop.f32.mrb[12].mxu1  ;;  %v2388_v29 = vrot.slane %v4945_v18, 7  ;;  %v597_v18 = vand.u32 127, %v433_v51 }
 0x149   : > { %v2386_v50 = vrot.slane %v1395_v0, 7  ;;  %v4946_v15 = vpop.f32.mrb[14].mxu0  ;;  %v1749_v37 = vpop.f32.mrb[13].mxu1 }
 0x14a   : > { %v2389_v39 = vrot.slane %v4946_v15, 7  ;;  %v1398_v4 = vpop.f32.mrb[15].mxu0  ;;  %v5026_v1 = vpop.f32.mrb[14].mxu1  ;;  %vm2326_vm1 = vcmp.eq.s32.totalorder %v597_v18, 0 }
 0x14b   : > { %v2387_v31 = vrot.slane %v1398_v4, 7  ;;  %v2490_v53 = vsel %vm2438_vm0, %v2385_v28, %v2386_v50  ;;  %v1752_v55 = vpop.f32.mrb[15].mxu1 }
 0x14c   : > { %v6118_v57 = vadd.f32 %v2490_v53, %v1749_v37  ;;  %v2487_v13 = vsel %vm2438_vm0, %v2388_v29, %v2389_v39  ;;  %5148 = vmatmul.mubr.bf16.gmra.mrb[120].mxu0 %v6011_v23 }
 0x14d   : > { %v2488_v19 = vsel %vm2438_vm0, %v2387_v31, %v2388_v29  ;;  %v6125_v35 = vadd.f32 %v5026_v1, %v2487_v13  ;;  %v2489_v2 = vsel %vm2438_vm0, %v2386_v50, %v2387_v31  ;;  %5151 = vmatprep.mubr.bf16.mxu0 %v6015_v3 }
 0x14e   : > { %v6130_v28 = vadd.f32 %v5025_v48, %v2488_v19  ;;  %v6132_v0 = vadd.f32 %v2489_v2, %v1752_v55 }
 0x14f   : > { %v4949_v15 = vpop.f32.mrb[16].mxu0 }
 0x150   : > { %v1411_v37 = vpop.f32.mrb[17].mxu0  ;;  %v5029_v4 = vpop.f32.mrb[16].mxu1  ;;  %v2392_v29 = vrot.slane %v4949_v15, 7 }
 0x151   : > { %v2390_v53 = vrot.slane %v1411_v37, 7  ;;  %v4950_v23 = vpop.f32.mrb[18].mxu0  ;;  %v1765_v25 = vpop.f32.mrb[17].mxu1 }
 0x152   : > { %v2393_v1 = vrot.slane %v4950_v23, 7  ;;  %v1414_v13 = vpop.f32.mrb[19].mxu0  ;;  %v5030_v38 = vpop.f32.mrb[18].mxu1 }
 0x153   : > { %v2391_v45 = vrot.slane %v1414_v13, 7  ;;  %v2486_v50 = vsel %vm2438_vm0, %v2389_v39, %v2390_v53  ;;  %v1768_v3 = vpop.f32.mrb[19].mxu1 }
 0x154   : > { %v2647_v48 = vsel %vm2326_vm1, 0.0, %v2486_v50  ;;  %v2483_v51 = vsel %vm2438_vm0, %v2392_v29, %v2393_v1  ;;  %5152 = vmatmul.mubr.bf16.gmra.mrb[124].mxu0 %v6025_v32 }
 0x155   : > { %v2484_v31 = vsel %vm2438_vm0, %v2391_v45, %v2392_v29  ;;  %v6141_v55 = vadd.f32 %v2647_v48, %v1765_v25  ;;  %v6143_v19 = vadd.f32 %v5030_v38, %v2483_v51  ;;  %v2485_v2 = vsel %vm2438_vm0, %v2390_v53, %v2391_v45 }
 0x156   : > { %v6147_v18 = vadd.f32 %v5029_v4, %v2484_v31  ;;  %v6149_v39 = vadd.f32 %v2485_v2, %v1768_v3 }
 0x157   : > { %v4953_v15 = vpop.f32.mrb[20].mxu0 }
 0x158   : > { %v1427_v37 = vpop.f32.mrb[21].mxu0  ;;  %v5033_v23 = vpop.f32.mrb[20].mxu1  ;;  %v2396_v26 = vrot.slane %v4953_v15, 7 }
 0x159   : > { %v2394_v13 = vrot.slane %v1427_v37, 7  ;;  %v4954_v50 = vpop.f32.mrb[22].mxu0  ;;  %v1781_v32 = vpop.f32.mrb[21].mxu1 }
 0x15a   : > { %v2397_v12 = vrot.slane %v4954_v50, 7  ;;  %v1430_v29 = vpop.f32.mrb[23].mxu0  ;;  %v5034_v25 = vpop.f32.mrb[22].mxu1 }
 0x15b   : > { %v2395_v48 = vrot.slane %v1430_v29, 7  ;;  %v2482_v38 = vsel %vm2438_vm0, %v2393_v1, %v2394_v13  ;;  %v1784_v51 = vpop.f32.mrb[23].mxu1 }
 0x15c   : > { %v6153_v45 = vadd.f32 %v2482_v38, %v1781_v32  ;;  %v2479_v4 = vsel %vm2438_vm0, %v2396_v26, %v2397_v12 }
 0x15d   : > { %v2480_v53 = vsel %vm2438_vm0, %v2395_v48, %v2396_v26  ;;  %v6159_v3 = vadd.f32 %v5034_v25, %v2479_v4  ;;  %v2481_v31 = vsel %vm2438_vm0, %v2394_v13, %v2395_v48 }
 0x15e   : > { %v6163_v2 = vadd.f32 %v5033_v23, %v2480_v53  ;;  %v6165_v15 = vadd.f32 %v2481_v31, %v1784_v51 }
 0x15f   : > { %v4957_v37 = vpop.f32.mrb[24].mxu0 }
 0x160   : > { %v1443_v1 = vpop.f32.mrb[25].mxu0  ;;  %v5037_v50 = vpop.f32.mrb[24].mxu1  ;;  %v2400_v41 = vrot.slane %v4957_v37, 7 }
 0x161   : > { %v2398_v32 = vrot.slane %v1443_v1, 7  ;;  %v4958_v29 = vpop.f32.mrb[26].mxu0  ;;  %v1797_v38 = vpop.f32.mrb[25].mxu1 }
 0x162   : > { %v2401_v27 = vrot.slane %v4958_v29, 7  ;;  %v1446_v59 = vpop.f32.mrb[27].mxu0  ;;  %v5038_v33 = vpop.f32.mrb[26].mxu1 }
 0x163   : > { %v2399_v26 = vrot.slane %v1446_v59, 7  ;;  %v2478_v25 = vsel %vm2438_vm0, %v2397_v12, %v2398_v32  ;;  %v1800_v4 = vpop.f32.mrb[27].mxu1 }
 0x164   : > { %v6169_v13 = vadd.f32 %v2478_v25, %v1797_v38  ;;  %v2475_v23 = vsel %vm2438_vm0, %v2400_v41, %v2401_v27 }
 0x165   : > { %v2476_v48 = vsel %vm2438_vm0, %v2399_v26, %v2400_v41  ;;  %v6175_v51 = vadd.f32 %v5038_v33, %v2475_v23  ;;  %v2477_v53 = vsel %vm2438_vm0, %v2398_v32, %v2399_v26 }
 0x166   : > { %v6179_v31 = vadd.f32 %v5037_v50, %v2476_v48  ;;  %v6181_v59 = vadd.f32 %v2477_v53, %v1800_v4 }
 0x167   : > { %v4961_v37 = vpop.f32.mrb[28].mxu0 }
 0x168   : > { %v1459_v12 = vpop.f32.mrb[29].mxu0  ;;  %v5041_v1 = vpop.f32.mrb[28].mxu1  ;;  %v2404_v58 = vrot.slane %v4961_v37, 7 }
 0x169   : > { %v2402_v29 = vrot.slane %v1459_v12, 7  ;;  %v4962_v38 = vpop.f32.mrb[30].mxu0  ;;  %v1813_v25 = vpop.f32.mrb[29].mxu1  ;;  %v709_v12 = vand.u32 127, %v449_v5 }
 0x16a   : > { %v2405_v7 = vrot.slane %v4962_v38, 7  ;;  %v1462_v41 = vpop.f32.mrb[31].mxu0  ;;  %v5042_v33 = vpop.f32.mrb[30].mxu1 }
 0x16b   : > { %v2403_v23 = vrot.slane %v1462_v41, 7  ;;  %v2474_v32 = vsel %vm2438_vm0, %v2401_v27, %v2402_v29  ;;  %v1816_v50 = vpop.f32.mrb[31].mxu1  ;;  %vm2342_vm2 = vcmp.eq.s32.totalorder %v709_v12, 0 }
 0x16c   : > { %v6186_v26 = vadd.f32 %v2474_v32, %v1813_v25  ;;  %v2471_v4 = vsel %vm2438_vm0, %v2404_v58, %v2405_v7 }
 0x16d   : > { %v2472_v48 = vsel %vm2438_vm0, %v2403_v23, %v2404_v58  ;;  %v6192_v53 = vadd.f32 %v5042_v33, %v2471_v4  ;;  %v2473_v37 = vsel %vm2438_vm0, %v2402_v29, %v2403_v23 }
 0x16e   : > { %v6196_v38 = vadd.f32 %v5041_v1, %v2472_v48  ;;  %v6198_v41 = vadd.f32 %v2473_v37, %v1816_v50 }
 0x16f   : > { %v4965_v27 = vpop.f32.mrb[32].mxu0 }
 0x170   : > { %v1475_v62 = vpop.f32.mrb[33].mxu0  ;;  %v5045_v25 = vpop.f32.mrb[32].mxu1  ;;  %v2408_v14 = vrot.slane %v4965_v27, 7 }
 0x171   : > { %v2406_v32 = vrot.slane %v1475_v62, 7  ;;  %v4966_v43 = vpop.f32.mrb[34].mxu0  ;;  %v1829_v6 = vpop.f32.mrb[33].mxu1 }
 0x172   : > { %v2409_v42 = vrot.slane %v4966_v43, 7  ;;  %v1478_v58 = vpop.f32.mrb[35].mxu0  ;;  %v5046_v33 = vpop.f32.mrb[34].mxu1 }
 0x173   : > { %v2407_v4 = vrot.slane %v1478_v58, 7  ;;  %v2470_v29 = vsel %vm2438_vm0, %v2405_v7, %v2406_v32  ;;  %v1832_v5 = vpop.f32.mrb[35].mxu1 }
 0x174   : > { %v2663_v1 = vsel %vm2342_vm2, 0.0, %v2470_v29  ;;  %v2467_v23 = vsel %vm2438_vm0, %v2408_v14, %v2409_v42 }
 0x175   : > { %v2468_v50 = vsel %vm2438_vm0, %v2407_v4, %v2408_v14  ;;  %v6206_v62 = vadd.f32 %v2663_v1, %v1829_v6  ;;  %v6208_v48 = vadd.f32 %v5046_v33, %v2467_v23  ;;  %v2469_v43 = vsel %vm2438_vm0, %v2406_v32, %v2407_v4 }
 0x176   : > { %v6212_v37 = vadd.f32 %v5045_v25, %v2468_v50  ;;  %v6214_v12 = vadd.f32 %v2469_v43, %v1832_v5 }
 0x177   : > { %v4969_v7 = vpop.f32.mrb[36].mxu0 }
 0x178   : > { %v1491_v27 = vpop.f32.mrb[37].mxu0  ;;  %v5049_v58 = vpop.f32.mrb[36].mxu1  ;;  %v2412_v47 = vrot.slane %v4969_v7, 7 }
 0x179   : > { %v2410_v29 = vrot.slane %v1491_v27, 7  ;;  %v4970_v61 = vpop.f32.mrb[38].mxu0  ;;  %v1845_v11 = vpop.f32.mrb[37].mxu1 }
 0x17a   : > { %v2413_v60 = vrot.slane %v4970_v61, 7  ;;  %v1494_v14 = vpop.f32.mrb[39].mxu0  ;;  %v5050_v6 = vpop.f32.mrb[38].mxu1 }
 0x17b   : > { %v2411_v1 = vrot.slane %v1494_v14, 7  ;;  %v2466_v33 = vsel %vm2438_vm0, %v2409_v42, %v2410_v29  ;;  %v1848_v23 = vpop.f32.mrb[39].mxu1 }
 0x17c   : > { %v6218_v32 = vadd.f32 %v2466_v33, %v1845_v11  ;;  %v2463_v25 = vsel %vm2438_vm0, %v2412_v47, %v2413_v60 }
 0x17d   : > { %v2464_v4 = vsel %vm2438_vm0, %v2411_v1, %v2412_v47  ;;  %v6224_v5 = vadd.f32 %v5050_v6, %v2463_v25  ;;  %v2465_v61 = vsel %vm2438_vm0, %v2410_v29, %v2411_v1 }
 0x17e   : > { %v6228_v50 = vadd.f32 %v5049_v58, %v2464_v4  ;;  %v6230_v43 = vadd.f32 %v2465_v61, %v1848_v23 }
 0x17f   : > { %6961 = vst [vmem:[#allocation40_spill] sm:$0xff] %v6224_v5  ;;  %v4973_v7 = vpop.f32.mrb[40].mxu0 }
 0x180   : > { %6962 = vst [vmem:[#allocation41_spill] sm:$0xff] %v6230_v43  ;;  %v1507_v42 = vpop.f32.mrb[41].mxu0  ;;  %v5053_v27 = vpop.f32.mrb[40].mxu1  ;;  %v2416_v34 = vrot.slane %v4973_v7, 7 }
 0x181   : > { %v2414_v11 = vrot.slane %v1507_v42, 7  ;;  %v4974_v14 = vpop.f32.mrb[42].mxu0  ;;  %v1861_v33 = vpop.f32.mrb[41].mxu1 }
 0x182   : > { %v2417_v46 = vrot.slane %v4974_v14, 7  ;;  %v1510_v21 = vpop.f32.mrb[43].mxu0  ;;  %v5054_v30 = vpop.f32.mrb[42].mxu1 }
 0x183   : > { %v2415_v47 = vrot.slane %v1510_v21, 7  ;;  %v2462_v6 = vsel %vm2438_vm0, %v2413_v60, %v2414_v11  ;;  %v1864_v25 = vpop.f32.mrb[43].mxu1 }
 0x184   : > { %v6234_v29 = vadd.f32 %v2462_v6, %v1861_v33  ;;  %v2459_v58 = vsel %vm2438_vm0, %v2416_v34, %v2417_v46 }
 0x185   : > { %v2460_v1 = vsel %vm2438_vm0, %v2415_v47, %v2416_v34  ;;  %v6240_v23 = vadd.f32 %v5054_v30, %v2459_v58  ;;  %v2461_v4 = vsel %vm2438_vm0, %v2414_v11, %v2415_v47 }
 0x186   : > { %6963 = vst [vmem:[#allocation42_spill] sm:$0xff] %v6234_v29  ;;  %v6244_v61 = vadd.f32 %v5053_v27, %v2460_v1  ;;  %v6246_v21 = vadd.f32 %v2461_v4, %v1864_v25 }
 0x187   : > { %6964 = vst [vmem:[#allocation43_spill] sm:$0xff] %v6240_v23  ;;  %v4977_v7 = vpop.f32.mrb[44].mxu0 }
 0x188   : > { %6965 = vst [vmem:[#allocation44_spill] sm:$0xff] %v6244_v61  ;;  %6966 = vst [vmem:[#allocation45_spill] sm:$0xff] %v6246_v21  ;;  %v1523_v60 = vpop.f32.mrb[45].mxu0  ;;  %v5057_v42 = vpop.f32.mrb[44].mxu1  ;;  %v2420_v17 = vrot.slane %v4977_v7, 7 }
 0x189   : > { %v2418_v14 = vrot.slane %v1523_v60, 7  ;;  %v4978_v33 = vpop.f32.mrb[46].mxu0  ;;  %v1877_v6 = vpop.f32.mrb[45].mxu1  ;;  %v821_v60 = vand.u32 127, %v465_v10 }
 0x18a   : > { %v2421_v29 = vrot.slane %v4978_v33, 7  ;;  %v1526_v34 = vpop.f32.mrb[47].mxu0  ;;  %v5058_v30 = vpop.f32.mrb[46].mxu1 }
 0x18b   : > { %v2419_v58 = vrot.slane %v1526_v34, 7  ;;  %v2458_v11 = vsel %vm2438_vm0, %v2417_v46, %v2418_v14  ;;  %v1880_v27 = vpop.f32.mrb[47].mxu1  ;;  %vm2358_vm3 = vcmp.eq.s32.totalorder %v821_v60, 0 }
 0x18c   : > { %v6251_v47 = vadd.f32 %v2458_v11, %v1877_v6  ;;  %v2455_v25 = vsel %vm2438_vm0, %v2420_v17, %v2421_v29 }
 0x18d   : > { %v2456_v1 = vsel %vm2438_vm0, %v2419_v58, %v2420_v17  ;;  %v6257_v4 = vadd.f32 %v5058_v30, %v2455_v25  ;;  %v2457_v7 = vsel %vm2438_vm0, %v2418_v14, %v2419_v58 }
 0x18e   : > { %6967 = vst [vmem:[#allocation46_spill] sm:$0xff] %v6251_v47  ;;  %v6261_v33 = vadd.f32 %v5057_v42, %v2456_v1  ;;  %v6263_v34 = vadd.f32 %v2457_v7, %v1880_v27 }
 0x18f   : > { %6968 = vst [vmem:[#allocation47_spill] sm:$0xff] %v6257_v4  ;;  %v4981_v46 = vpop.f32.mrb[48].mxu0 }
 0x190   : > { %6969 = vst [vmem:[#allocation48_spill] sm:$0xff] %v6261_v33  ;;  %6970 = vst [vmem:[#allocation49_spill] sm:$0xff] %v6263_v34  ;;  %v1539_v23 = vpop.f32.mrb[49].mxu0  ;;  %v5061_v6 = vpop.f32.mrb[48].mxu1  ;;  %v2424_v61 = vrot.slane %v4981_v46, 7 }
 0x191   : > { %v2422_v11 = vrot.slane %v1539_v23, 7  ;;  %v4982_v47 = vpop.f32.mrb[50].mxu0  ;;  %v1893_v21 = vpop.f32.mrb[49].mxu1 }
 0x192   : > { %v2425_v5 = vrot.slane %v4982_v47, 7  ;;  %v1542_v17 = vpop.f32.mrb[51].mxu0  ;;  %v5062_v30 = vpop.f32.mrb[50].mxu1 }
 0x193   : > { %v2423_v25 = vrot.slane %v1542_v17, 7  ;;  %v2454_v14 = vsel %vm2438_vm0, %v2421_v29, %v2422_v11  ;;  %v1896_v10 = vpop.f32.mrb[51].mxu1 }
 0x194   : > { %v2679_v42 = vsel %vm2358_vm3, 0.0, %v2454_v14  ;;  %v2451_v58 = vsel %vm2438_vm0, %v2424_v61, %v2425_v5 }
 0x195   : > { %v2452_v27 = vsel %vm2438_vm0, %v2423_v25, %v2424_v61  ;;  %v6271_v23 = vadd.f32 %v2679_v42, %v1893_v21  ;;  %v6273_v1 = vadd.f32 %v5062_v30, %v2451_v58  ;;  %v2453_v47 = vsel %vm2438_vm0, %v2422_v11, %v2423_v25 }
 0x196   : > { %v6277_v7 = vadd.f32 %v5061_v6, %v2452_v27  ;;  %v6279_v60 = vadd.f32 %v2453_v47, %v1896_v10 }
 0x197   : > { %6971 = vst [vmem:[#allocation50_spill] sm:$0xff] %v6271_v23  ;;  %6972 = vst [vmem:[#allocation51_spill] sm:$0xff] %v6273_v1  ;;  %v4985_v29 = vpop.f32.mrb[52].mxu0 }
 0x198   : > { %6973 = vst [vmem:[#allocation52_spill] sm:$0xff] %v6279_v60  ;;  %v1555_v46 = vpop.f32.mrb[53].mxu0  ;;  %v5065_v17 = vpop.f32.mrb[52].mxu1  ;;  %v2428_v33 = vrot.slane %v4985_v29, 7 }
 0x199   : > { %v2426_v14 = vrot.slane %v1555_v46, 7  ;;  %v4986_v4 = vpop.f32.mrb[54].mxu0  ;;  %v1909_v34 = vpop.f32.mrb[53].mxu1 }
 0x19a   : > { %v2429_v43 = vrot.slane %v4986_v4, 7  ;;  %v1558_v61 = vpop.f32.mrb[55].mxu0  ;;  %v5066_v21 = vpop.f32.mrb[54].mxu1 }
 0x19b   : > { %v2427_v42 = vrot.slane %v1558_v61, 7  ;;  %v2450_v30 = vsel %vm2438_vm0, %v2425_v5, %v2426_v14  ;;  %v1912_v58 = vpop.f32.mrb[55].mxu1 }
 0x19c   : > { %v6283_v11 = vadd.f32 %v2450_v30, %v1909_v34  ;;  %v2447_v6 = vsel %vm2438_vm0, %v2428_v33, %v2429_v43 }
 0x19d   : > { %v2448_v25 = vsel %vm2438_vm0, %v2427_v42, %v2428_v33  ;;  %v6289_v10 = vadd.f32 %v5066_v21, %v2447_v6  ;;  %v2449_v4 = vsel %vm2438_vm0, %v2426_v14, %v2427_v42 }
 0x19e   : > { %6974 = vst [vmem:[#allocation53_spill] sm:$0xff] %v6283_v11  ;;  %v6293_v27 = vadd.f32 %v5065_v17, %v2448_v25  ;;  %v6295_v47 = vadd.f32 %v2449_v4, %v1912_v58 }
 0x19f   : > { %6975 = vst [vmem:[#allocation54_spill] sm:$0xff] %v6289_v10  ;;  %v4989_v29 = vpop.f32.mrb[56].mxu0 }
 0x1a0   : > { %v1571_v5 = vpop.f32.mrb[57].mxu0  ;;  %v5069_v46 = vpop.f32.mrb[56].mxu1  ;;  %v2432_v11 = vrot.slane %v4989_v29, 7 }
 0x1a1   : > { %v2430_v34 = vrot.slane %v1571_v5, 7  ;;  %v4990_v61 = vpop.f32.mrb[58].mxu0  ;;  %v1925_v30 = vpop.f32.mrb[57].mxu1 }
 0x1a2   : > { %v2433_v1 = vrot.slane %v4990_v61, 7  ;;  %v1574_v60 = vpop.f32.mrb[59].mxu0  ;;  %v5070_v23 = vpop.f32.mrb[58].mxu1 }
 0x1a3   : > { %v2431_v33 = vrot.slane %v1574_v60, 7  ;;  %v2446_v21 = vsel %vm2438_vm0, %v2429_v43, %v2430_v34  ;;  %v1928_v6 = vpop.f32.mrb[59].mxu1  ;;  %v485_v43 = vand.u32 127, %v6054_v40 }
 0x1a4   : > { %v6299_v14 = vadd.f32 %v2446_v21, %v1925_v30  ;;  %v2443_v17 = vsel %vm2438_vm0, %v2432_v11, %v2433_v1 }
 0x1a5   : > { %v2444_v42 = vsel %vm2438_vm0, %v2431_v33, %v2432_v11  ;;  %v6305_v58 = vadd.f32 %v5070_v23, %v2443_v17  ;;  %v2445_v25 = vsel %vm2438_vm0, %v2430_v34, %v2431_v33  ;;  %vm2310_vm4 = vcmp.eq.s32.totalorder %v485_v43, 0 }
 0x1a6   : > { %6976 = vst [vmem:[#allocation55_spill] sm:$0xff] %v6299_v14  ;;  %v6309_v4 = vadd.f32 %v5069_v46, %v2444_v42  ;;  %v6311_v60 = vadd.f32 %v2445_v25, %v1928_v6  ;;  %v6978_v33 = vrot.slane %v6057_v52, 7 }
 0x1a7   : > { %6977 = vst [vmem:[#allocation56_spill] sm:$0xff] %v6305_v58  ;;  %v4993_v29 = vpop.f32.mrb[60].mxu0 }
 0x1a8   : > { %v1587_v5 = vpop.f32.mrb[61].mxu0  ;;  %v5073_v61 = vpop.f32.mrb[60].mxu1  ;;  %v2436_v10 = vrot.slane %v4993_v29, 7 }
 0x1a9   : > { %v2434_v30 = vrot.slane %v1587_v5, 7  ;;  %v4994_v21 = vpop.f32.mrb[62].mxu0  ;;  %v1941_v14 = vpop.f32.mrb[61].mxu1 }
 0x1aa   : > { %v2437_v11 = vrot.slane %v4994_v21, 7  ;;  %v1590_v23 = vpop.f32.mrb[63].mxu0  ;;  %v5074_v17 = vpop.f32.mrb[62].mxu1 }
 0x1ab   : > { %v2435_v58 = vrot.slane %v1590_v23, 7  ;;  %v2442_v46 = vsel %vm2438_vm0, %v2433_v1, %v2434_v30  ;;  %v1944_v34 = vpop.f32.mrb[63].mxu1 }
 0x1ac   : > { %v2502_v6 = vsel %vm2438_vm0, %v2437_v11, %v6978_v33  ;;  %v6320_v42 = vadd.f32 %v2442_v46, %v1941_v14  ;;  %v2439_v25 = vsel %vm2438_vm0, %v2436_v10, %v2437_v11 }
 0x1ad   : > { %v2631_v29 = vsel %vm2310_vm4, 0.0, %v2502_v6  ;;  %v2440_v43 = vsel %vm2438_vm0, %v2435_v58, %v2436_v10  ;;  %v6326_v5 = vadd.f32 %v5074_v17, %v2439_v25  ;;  %v2441_v1 = vsel %vm2438_vm0, %v2434_v30, %v2435_v58 }
 0x1ae   : > { %6979 = vst [vmem:[#allocation57_spill] sm:$0xff] %v6320_v42  ;;  %v2695_v21 = vadd.f32 %v2631_v29, %v6060_v16  ;;  %v6331_v52 = vadd.f32 %v5073_v61, %v2440_v43  ;;  %v6333_v23 = vadd.f32 %v2441_v1, %v1944_v34 }
 0x1af   : > { %6980 = vst [vmem:[#allocation58_spill] sm:$0xff] %v6326_v5  ;;  %v5093_v14 = vpop.f32.mrb[64].mxu0 }
 0x1b0   : > { %6981 = vst [vmem:[#allocation59_spill] sm:$0xff] %v6331_v52  ;;  %6982 = vst [vmem:[#allocation60_spill] sm:$0xff] %v6333_v23  ;;  %v6335_v46 = vpop.f32.mrb[65].mxu0  ;;  %v2825_v33 = vrot.slane %v5093_v14, 1 }
 0x1b1   : > { %v5094_v11 = vpop.f32.mrb[66].mxu0  ;;  %v2823_v17 = vrot.slane %v6335_v46, 1 }
 0x1b2   : > { %v2826_v6 = vrot.slane %v5094_v11, 1  ;;  %v2058_v10 = vpop.f32.mrb[67].mxu0 }
 0x1b3   : > { %v2824_v25 = vrot.slane %v2058_v10, 1 }
 0x1b4   : > { %v2948_v58 = vsel %vm2887_vm5, %v2825_v33, %v2826_v6 }
 0x1b5   : > { %v3146_v16 = vadd.f32 %v2948_v58, %v6075_v8  ;;  %v2949_v61 = vsel %vm2887_vm5, %v2824_v25, %v2825_v33  ;;  %v2950_v30 = vsel %vm2887_vm5, %v2823_v17, %v2824_v25  ;;  %v7004_v46 = vld [vmem:[#allocation57_spill] sm:$0xff] }
 0x1b6   : > { %v3144_v34 = vadd.f32 %v2950_v30, %v2695_v21  ;;  %v3145_v29 = vadd.f32 %v2949_v61, %v6077_v9 }
 0x1b7   : > { %v5097_v43 = vpop.f32.mrb[68].mxu0  ;;  %v3210_v30 = vmax.f32 %v3146_v16, 0.0 }
 0x1b8   : > { %v3208_v1 = vmax.f32 %v3144_v34, 0.0  ;;  %v3209_v14 = vmax.f32 %v3145_v29, 0.0  ;;  %v2071_v11 = vpop.f32.mrb[69].mxu0  ;;  %v2829_v42 = vrot.slane %v5097_v43, 1 }
 0x1b9   : > { %v2827_v10 = vrot.slane %v2071_v11, 1  ;;  %v5098_v23 = vpop.f32.mrb[70].mxu0 }
 0x1ba   : > { %v2830_v8 = vrot.slane %v5098_v23, 1  ;;  %v2074_v58 = vpop.f32.mrb[71].mxu0  ;;  %v3272_v5 = vpack.c.bf16 %v3209_v14, %v3208_v1 }
 0x1bb   : > { %v2947_v33 = vsel %vm2887_vm5, %v2826_v6, %v2827_v10  ;;  %v2828_v52 = vrot.slane %v2074_v58, 1 }
 0x1bc   : > { %v3147_v25 = vadd.f32 %v2947_v33, %v6068_v56  ;;  %v2944_v9 = vsel %vm2887_vm5, %v2829_v42, %v2830_v8  ;;  %5159 = vmatprep.mubr.msk.bf16.mxu1 %vm3320_vm6, %v3272_v5 }
 0x1bd   : > { %v3150_v21 = vadd.f32 %v2944_v9, %v6093_v20  ;;  %v2945_v61 = vsel %vm2887_vm5, %v2828_v52, %v2829_v42  ;;  %v2946_v23 = vsel %vm2887_vm5, %v2827_v10, %v2828_v52 }
 0x1be   : > { %v3211_v34 = vmax.f32 %v3147_v25, 0.0  ;;  %v3148_v6 = vadd.f32 %v2946_v23, %v6081_v36  ;;  %v3149_v29 = vadd.f32 %v2945_v61, %v6095_v24 }
 0x1bf   : > { %v5101_v56 = vpop.f32.mrb[72].mxu0  ;;  %v3214_v23 = vmax.f32 %v3150_v21, 0.0 }
 0x1c0   : > { %v3273_v43 = vpack.c.bf16 %v3211_v34, %v3210_v30  ;;  %v3212_v1 = vmax.f32 %v3148_v6, 0.0  ;;  %v3213_v14 = vmax.f32 %v3149_v29, 0.0  ;;  %v2087_v11 = vpop.f32.mrb[73].mxu0  ;;  %v2833_v20 = vrot.slane %v5101_v56, 1 }
 0x1c1   : > { %v2831_v5 = vrot.slane %v2087_v11, 1  ;;  %v5102_v58 = vpop.f32.mrb[74].mxu0 }
 0x1c2   : > { %v2834_v33 = vrot.slane %v5102_v58, 1  ;;  %v2090_v9 = vpop.f32.mrb[75].mxu0  ;;  %5160 = vmatmul.mubr.msk.bf16.vlgmr.msra.gmra.mrb[64].mxu1 %vm3320_vm6, %v3273_v43  ;;  %v3274_v42 = vpack.c.bf16 %v3213_v14, %v3212_v1 }
 0x1c3   : > { %v2943_v52 = vsel %vm2887_vm5, %v2830_v8, %v2831_v5  ;;  %v2832_v16 = vrot.slane %v2090_v9, 1 }
 0x1c4   : > { %v3151_v36 = vadd.f32 %v2943_v52, %v6088_v44  ;;  %v2940_v24 = vsel %vm2887_vm5, %v2833_v20, %v2834_v33  ;;  %5163 = vmatprep.mubr.msk.bf16.mxu1 %vm3320_vm6, %v3274_v42 }
 0x1c5   : > { %v3154_v10 = vadd.f32 %v2940_v24, %v6111_v63  ;;  %v2941_v25 = vsel %vm2887_vm5, %v2832_v16, %v2833_v20  ;;  %v2942_v61 = vsel %vm2887_vm5, %v2831_v5, %v2832_v16  ;;  %v432_v63 = vadd.s32 120, %v6054_v40 }
 0x1c6   : > { %v3215_v30 = vmax.f32 %v3151_v36, 0.0  ;;  %v3152_v8 = vadd.f32 %v2942_v61, %v6099_v22  ;;  %v3153_v34 = vadd.f32 %v2941_v25, %v6113_v54 }
 0x1c7   : > { %v5105_v44 = vpop.f32.mrb[76].mxu0  ;;  %v590_v36 = vand.u32 127, %v432_v63  ;;  %v3218_v24 = vmax.f32 %v3154_v10, 0.0 }
 0x1c8   : > { %v3216_v6 = vmax.f32 %v3152_v8, 0.0  ;;  %v3217_v29 = vmax.f32 %v3153_v34, 0.0  ;;  %v2103_v56 = vpop.f32.mrb[77].mxu0  ;;  %v3275_v43 = vpack.c.bf16 %v3215_v30, %v3214_v23  ;;  %v2837_v11 = vrot.slane %v5105_v44, 1 }
 0x1c9   : > { %v2835_v1 = vrot.slane %v2103_v56, 1  ;;  %v5106_v14 = vpop.f32.mrb[78].mxu0  ;;  %vm2774_vm7 = vcmp.eq.s32.totalorder %v590_v36, 127 }
 0x1ca   : > { %v2838_v58 = vrot.slane %v5106_v14, 1  ;;  %v2106_v20 = vpop.f32.mrb[79].mxu0  ;;  %5164 = vmatmul.mubr.msk.bf16.gmra.mrb[68].mxu1 %vm3320_vm6, %v3275_v43  ;;  %v3276_v21 = vpack.c.bf16 %v3217_v29, %v3216_v6 }
 0x1cb   : > { %v2939_v22 = vsel %vm2887_vm5, %v2834_v33, %v2835_v1  ;;  %v2836_v5 = vrot.slane %v2106_v20, 1 }
 0x1cc   : > { %v3155_v54 = vadd.f32 %v2939_v22, %v6106_v49  ;;  %v2936_v9 = vsel %vm2887_vm5, %v2837_v11, %v2838_v58  ;;  %5167 = vmatprep.mubr.msk.bf16.mxu1 %vm3320_vm6, %v3276_v21 }
 0x1cd   : > { %v3158_v42 = vadd.f32 %v2936_v9, %v6130_v28  ;;  %v2937_v52 = vsel %vm2887_vm5, %v2836_v5, %v2837_v11  ;;  %v2938_v16 = vsel %vm2887_vm5, %v2835_v1, %v2836_v5 }
 0x1ce   : > { %v3219_v25 = vmax.f32 %v3155_v54, 0.0  ;;  %v3156_v33 = vadd.f32 %v2938_v16, %v6118_v57  ;;  %v3157_v49 = vadd.f32 %v2937_v52, %v6132_v0 }
 0x1cf   : > { %v5109_v61 = vpop.f32.mrb[80].mxu0  ;;  %v3222_v22 = vmax.f32 %v3158_v42, 0.0 }
 0x1d0   : > { %v3220_v23 = vmax.f32 %v3156_v33, 0.0  ;;  %v3221_v30 = vmax.f32 %v3157_v49, 0.0  ;;  %v2119_v8 = vpop.f32.mrb[81].mxu0  ;;  %v3277_v34 = vpack.c.bf16 %v3219_v25, %v3218_v24  ;;  %v2841_v6 = vrot.slane %v5109_v61, 1 }
 0x1d1   : > { %v2839_v28 = vrot.slane %v2119_v8, 1  ;;  %v5110_v44 = vpop.f32.mrb[82].mxu0 }
 0x1d2   : > { %v2842_v29 = vrot.slane %v5110_v44, 1  ;;  %v2122_v56 = vpop.f32.mrb[83].mxu0  ;;  %5168 = vmatmul.mubr.msk.bf16.gmra.mrb[72].mxu1 %vm3320_vm6, %v3277_v34  ;;  %v3278_v43 = vpack.c.bf16 %v3221_v30, %v3220_v23 }
 0x1d3   : > { %v2935_v10 = vsel %vm2887_vm5, %v2838_v58, %v2839_v28  ;;  %v2840_v57 = vrot.slane %v2122_v56, 1 }
 0x1d4   : > { %v3095_v1 = vsel %vm2774_vm7, 0.0, %v2935_v10  ;;  %v2932_v0 = vsel %vm2887_vm5, %v2841_v6, %v2842_v29  ;;  %5171 = vmatprep.mubr.msk.bf16.mxu1 %vm3320_vm6, %v3278_v43 }
 0x1d5   : > { %v3159_v14 = vadd.f32 %v3095_v1, %v6125_v35  ;;  %v3162_v63 = vadd.f32 %v2932_v0, %v6147_v18  ;;  %v2933_v11 = vsel %vm2887_vm5, %v2840_v57, %v2841_v6  ;;  %v2934_v20 = vsel %vm2887_vm5, %v2839_v28, %v2840_v57 }
 0x1d6   : > { %v3160_v21 = vadd.f32 %v2934_v20, %v6141_v55  ;;  %v3161_v58 = vadd.f32 %v2933_v11, %v6149_v39 }
 0x1d7   : > { %v3223_v5 = vmax.f32 %v3159_v14, 0.0  ;;  %v5113_v54 = vpop.f32.mrb[84].mxu0  ;;  %v3226_v34 = vmax.f32 %v3162_v63, 0.0 }
 0x1d8   : > { %v3224_v9 = vmax.f32 %v3160_v21, 0.0  ;;  %v3225_v52 = vmax.f32 %v3161_v58, 0.0  ;;  %v2135_v16 = vpop.f32.mrb[85].mxu0  ;;  %v2845_v18 = vrot.slane %v5113_v54, 1 }
 0x1d9   : > { %v2843_v36 = vrot.slane %v2135_v16, 1  ;;  %v5114_v35 = vpop.f32.mrb[86].mxu0  ;;  %v3279_v24 = vpack.c.bf16 %v3223_v5, %v3222_v22 }
 0x1da   : > { %v2846_v25 = vrot.slane %v5114_v35, 1  ;;  %v2138_v33 = vpop.f32.mrb[87].mxu0  ;;  %v3280_v49 = vpack.c.bf16 %v3225_v52, %v3224_v9 }
 0x1db   : > { %v2931_v61 = vsel %vm2887_vm5, %v2842_v29, %v2843_v36  ;;  %v2844_v23 = vrot.slane %v2138_v33, 1  ;;  %5172 = vmatmul.mubr.msk.bf16.gmra.mrb[76].mxu1 %vm3320_vm6, %v3279_v24 }
 0x1dc   : > { %v3163_v55 = vadd.f32 %v2931_v61, %v6143_v19  ;;  %v2928_v39 = vsel %vm2887_vm5, %v2845_v18, %v2846_v25  ;;  %5175 = vmatprep.mubr.msk.bf16.mxu1 %vm3320_vm6, %v3280_v49 }
 0x1dd   : > { %v3166_v42 = vadd.f32 %v2928_v39, %v6163_v2  ;;  %v2929_v30 = vsel %vm2887_vm5, %v2844_v23, %v2845_v18  ;;  %v2930_v8 = vsel %vm2887_vm5, %v2843_v36, %v2844_v23 }
 0x1de   : > { %v3227_v28 = vmax.f32 %v3163_v55, 0.0  ;;  %v3164_v44 = vadd.f32 %v2930_v8, %v6153_v45  ;;  %v3165_v6 = vadd.f32 %v2929_v30, %v6165_v15 }
 0x1df   : > { %v5117_v19 = vpop.f32.mrb[88].mxu0  ;;  %v3230_v5 = vmax.f32 %v3166_v42, 0.0 }
 0x1e0   : > { %v3228_v29 = vmax.f32 %v3164_v44, 0.0  ;;  %v3229_v56 = vmax.f32 %v3165_v6, 0.0  ;;  %v2151_v43 = vpop.f32.mrb[89].mxu0  ;;  %v3281_v10 = vpack.c.bf16 %v3227_v28, %v3226_v34  ;;  %v2849_v2 = vrot.slane %v5117_v19, 1 }
 0x1e1   : > { %v2847_v57 = vrot.slane %v2151_v43, 1  ;;  %v5118_v1 = vpop.f32.mrb[90].mxu0 }
 0x1e2   : > { %v2850_v0 = vrot.slane %v5118_v1, 1  ;;  %v2154_v14 = vpop.f32.mrb[91].mxu0  ;;  %v3282_v11 = vpack.c.bf16 %v3229_v56, %v3228_v29 }
 0x1e3   : > { %v2927_v20 = vsel %vm2887_vm5, %v2846_v25, %v2847_v57  ;;  %v2848_v63 = vrot.slane %v2154_v14, 1  ;;  %5176 = vmatmul.mubr.msk.bf16.gmra.mrb[80].mxu1 %vm3320_vm6, %v3281_v10 }
 0x1e4   : > { %v3167_v45 = vadd.f32 %v2927_v20, %v6159_v3  ;;  %v2924_v15 = vsel %vm2887_vm5, %v2849_v2, %v2850_v0  ;;  %5179 = vmatprep.mubr.msk.bf16.mxu1 %vm3320_vm6, %v3282_v11 }
 0x1e5   : > { %v3170_v21 = vadd.f32 %v2924_v15, %v6179_v31  ;;  %v2925_v58 = vsel %vm2887_vm5, %v2848_v63, %v2849_v2  ;;  %v2926_v22 = vsel %vm2887_vm5, %v2847_v57, %v2848_v63  ;;  %v448_v31 = vadd.s32 248, %v6054_v40 }
 0x1e6   : > { %v3231_v54 = vmax.f32 %v3167_v45, 0.0  ;;  %v3168_v9 = vadd.f32 %v2926_v22, %v6169_v13  ;;  %v3169_v52 = vadd.f32 %v2925_v58, %v6181_v59 }
 0x1e7   : > { %v5121_v3 = vpop.f32.mrb[92].mxu0  ;;  %v702_v34 = vand.u32 127, %v448_v31  ;;  %v3234_v28 = vmax.f32 %v3170_v21, 0.0 }
 0x1e8   : > { %v3232_v16 = vmax.f32 %v3168_v9, 0.0  ;;  %v3233_v36 = vmax.f32 %v3169_v52, 0.0  ;;  %v2167_v35 = vpop.f32.mrb[93].mxu0  ;;  %v3283_v24 = vpack.c.bf16 %v3231_v54, %v3230_v5  ;;  %v2853_v33 = vrot.slane %v5121_v3, 1 }
 0x1e9   : > { %v2851_v18 = vrot.slane %v2167_v35, 1  ;;  %v5122_v25 = vpop.f32.mrb[94].mxu0  ;;  %vm2790_vm8 = vcmp.eq.s32.totalorder %v702_v34, 127 }
 0x1ea   : > { %v2854_v49 = vrot.slane %v5122_v25, 1  ;;  %v2170_v61 = vpop.f32.mrb[95].mxu0  ;;  %v3284_v23 = vpack.c.bf16 %v3233_v36, %v3232_v16 }
 0x1eb   : > { %v2923_v55 = vsel %vm2887_vm5, %v2850_v0, %v2851_v18  ;;  %v2852_v39 = vrot.slane %v2170_v61, 1  ;;  %5180 = vmatmul.mubr.msk.bf16.gmra.mrb[84].mxu1 %vm3320_vm6, %v3283_v24 }
 0x1ec   : > { %v3171_v13 = vadd.f32 %v2923_v55, %v6175_v51  ;;  %v2920_v59 = vsel %vm2887_vm5, %v2853_v33, %v2854_v49  ;;  %5183 = vmatprep.mubr.msk.bf16.mxu1 %vm3320_vm6, %v3284_v23 }
 0x1ed   : > { %v3174_v42 = vadd.f32 %v2920_v59, %v6196_v38  ;;  %v2921_v30 = vsel %vm2887_vm5, %v2852_v39, %v2853_v33  ;;  %v2922_v8 = vsel %vm2887_vm5, %v2851_v18, %v2852_v39  ;;  %v6983_v59 = vld [vmem:[#allocation41_spill] sm:$0xff] }
 0x1ee   : > { %v3235_v44 = vmax.f32 %v3171_v13, 0.0  ;;  %v3172_v6 = vadd.f32 %v2922_v8, %v6186_v26  ;;  %v3173_v51 = vadd.f32 %v2921_v30, %v6198_v41 }
 0x1ef   : > { %v5125_v19 = vpop.f32.mrb[96].mxu0  ;;  %v3238_v5 = vmax.f32 %v3174_v42, 0.0 }
 0x1f0   : > { %v3236_v29 = vmax.f32 %v3172_v6, 0.0  ;;  %v3237_v56 = vmax.f32 %v3173_v51, 0.0  ;;  %v2183_v43 = vpop.f32.mrb[97].mxu0  ;;  %v3285_v10 = vpack.c.bf16 %v3235_v44, %v3234_v28  ;;  %v2857_v1 = vrot.slane %v5125_v19, 1 }
 0x1f1   : > { %v2855_v38 = vrot.slane %v2183_v43, 1  ;;  %v5126_v57 = vpop.f32.mrb[98].mxu0 }
 0x1f2   : > { %v2858_v2 = vrot.slane %v5126_v57, 1  ;;  %v2186_v0 = vpop.f32.mrb[99].mxu0  ;;  %v3286_v14 = vpack.c.bf16 %v3237_v56, %v3236_v29  ;;  %v6985_v57 = vld [vmem:[#allocation44_spill] sm:$0xff] }
 0x1f3   : > { %v2919_v11 = vsel %vm2887_vm5, %v2854_v49, %v2855_v38  ;;  %v2856_v20 = vrot.slane %v2186_v0, 1  ;;  %5184 = vmatmul.mubr.msk.bf16.gmra.mrb[88].mxu1 %vm3320_vm6, %v3285_v10 }
 0x1f4   : > { %v3111_v26 = vsel %vm2790_vm8, 0.0, %v2919_v11  ;;  %v2916_v41 = vsel %vm2887_vm5, %v2857_v1, %v2858_v2  ;;  %5187 = vmatprep.mubr.msk.bf16.mxu1 %vm3320_vm6, %v3286_v14 }
 0x1f5   : > { %v3175_v63 = vadd.f32 %v3111_v26, %v6192_v53  ;;  %v3178_v45 = vadd.f32 %v2916_v41, %v6212_v37  ;;  %v2917_v15 = vsel %vm2887_vm5, %v2856_v20, %v2857_v1  ;;  %v2918_v21 = vsel %vm2887_vm5, %v2855_v38, %v2856_v20  ;;  %v6986_v20 = vld [vmem:[#allocation42_spill] sm:$0xff]  ;;  %v6987_v41 = vld [vmem:[#allocation45_spill] sm:$0xff] }
 0x1f6   : > { %v3176_v58 = vadd.f32 %v2918_v21, %v6206_v62  ;;  %v3177_v22 = vadd.f32 %v2917_v15, %v6214_v12 }
 0x1f7   : > { %v3239_v54 = vmax.f32 %v3175_v63, 0.0  ;;  %v5129_v9 = vpop.f32.mrb[100].mxu0  ;;  %v3242_v55 = vmax.f32 %v3178_v45, 0.0 }
 0x1f8   : > { %v3240_v52 = vmax.f32 %v3176_v58, 0.0  ;;  %v3241_v3 = vmax.f32 %v3177_v22, 0.0  ;;  %v2199_v16 = vpop.f32.mrb[101].mxu0  ;;  %v2861_v37 = vrot.slane %v5129_v9, 1  ;;  %v464_v9 = vadd.s32 376, %v6054_v40 }
 0x1f9   : > { %v2859_v36 = vrot.slane %v2199_v16, 1  ;;  %v5130_v53 = vpop.f32.mrb[102].mxu0  ;;  %v3287_v35 = vpack.c.bf16 %v3239_v54, %v3238_v5 }
 0x1fa   : > { %v2862_v24 = vrot.slane %v5130_v53, 1  ;;  %v2202_v18 = vpop.f32.mrb[103].mxu0  ;;  %v3288_v25 = vpack.c.bf16 %v3241_v3, %v3240_v52 }
 0x1fb   : > { %v2915_v31 = vsel %vm2887_vm5, %v2858_v2, %v2859_v36  ;;  %v2860_v33 = vrot.slane %v2202_v18, 1  ;;  %5188 = vmatmul.mubr.msk.bf16.gmra.mrb[92].mxu1 %vm3320_vm6, %v3287_v35 }
 0x1fc   : > { %v3179_v62 = vadd.f32 %v2915_v31, %v6208_v48  ;;  %v2912_v12 = vsel %vm2887_vm5, %v2861_v37, %v2862_v24  ;;  %5191 = vmatprep.mubr.msk.bf16.mxu1 %vm3320_vm6, %v3288_v25  ;;  %v6989_v25 = vld [vmem:[#allocation48_spill] sm:$0xff] }
 0x1fd   : > { %v3182_v49 = vadd.f32 %v2912_v12, %v6228_v50  ;;  %v2913_v61 = vsel %vm2887_vm5, %v2860_v33, %v2861_v37  ;;  %v2914_v23 = vsel %vm2887_vm5, %v2859_v36, %v2860_v33  ;;  %v6988_v37 = vld [vmem:[#allocation43_spill] sm:$0xff]  ;;  %v814_v12 = vand.u32 127, %v464_v9 }
 0x1fe   : > { %v3243_v39 = vmax.f32 %v3179_v62, 0.0  ;;  %v3180_v13 = vadd.f32 %v2914_v23, %v6218_v32  ;;  %v3181_v42 = vadd.f32 %v2913_v61, %v6983_v59  ;;  %v6984_v32 = vld [vmem:[#allocation40_spill] sm:$0xff]  ;;  %v6990_v23 = vld [vmem:[#allocation46_spill] sm:$0xff] }
 0x1ff   : > { %v5133_v48 = vpop.f32.mrb[104].mxu0  ;;  %v3246_v14 = vmax.f32 %v3182_v49, 0.0  ;;  %vm2806_vm9 = vcmp.eq.s32.totalorder %v814_v12, 127 }
 0x200   : > { %v3244_v30 = vmax.f32 %v3180_v13, 0.0  ;;  %v3245_v8 = vmax.f32 %v3181_v42, 0.0  ;;  %v2215_v34 = vpop.f32.mrb[105].mxu0  ;;  %v3289_v28 = vpack.c.bf16 %v3243_v39, %v3242_v55  ;;  %v2865_v50 = vrot.slane %v5133_v48, 1  ;;  %v6991_v39 = vld [vmem:[#allocation49_spill] sm:$0xff] }
 0x201   : > { %v2863_v44 = vrot.slane %v2215_v34, 1  ;;  %v5134_v6 = vpop.f32.mrb[106].mxu0 }
 0x202   : > { %v2866_v51 = vrot.slane %v5134_v6, 1  ;;  %v2218_v19 = vpop.f32.mrb[107].mxu0  ;;  %v3290_v29 = vpack.c.bf16 %v3245_v8, %v3244_v30 }
 0x203   : > { %v2911_v56 = vsel %vm2887_vm5, %v2862_v24, %v2863_v44  ;;  %v2864_v43 = vrot.slane %v2218_v19, 1  ;;  %5192 = vmatmul.mubr.msk.bf16.gmra.mrb[96].mxu1 %vm3320_vm6, %v3289_v28 }
 0x204   : > { %v3183_v10 = vadd.f32 %v2911_v56, %v6984_v32  ;;  %v2908_v38 = vsel %vm2887_vm5, %v2865_v50, %v2866_v51  ;;  %5195 = vmatprep.mubr.msk.bf16.mxu1 %vm3320_vm6, %v3290_v29  ;;  %v6992_v32 = vld [vmem:[#allocation47_spill] sm:$0xff] }
 0x205   : > { %v3186_v1 = vadd.f32 %v2908_v38, %v6985_v57  ;;  %v2909_v2 = vsel %vm2887_vm5, %v2864_v43, %v2865_v50  ;;  %v2910_v0 = vsel %vm2887_vm5, %v2863_v44, %v2864_v43 }
 0x206   : > { %v3247_v11 = vmax.f32 %v3183_v10, 0.0  ;;  %v3184_v26 = vadd.f32 %v2910_v0, %v6986_v20  ;;  %v3185_v63 = vadd.f32 %v2909_v2, %v6987_v41  ;;  %v6993_v2 = vld [vmem:[#allocation50_spill] sm:$0xff] }
 0x207   : > { %v5137_v45 = vpop.f32.mrb[108].mxu0  ;;  %v3250_v49 = vmax.f32 %v3186_v1, 0.0 }
 0x208   : > { %v3248_v15 = vmax.f32 %v3184_v26, 0.0  ;;  %v3249_v21 = vmax.f32 %v3185_v63, 0.0  ;;  %v2231_v58 = vpop.f32.mrb[109].mxu0  ;;  %v3291_v22 = vpack.c.bf16 %v3247_v11, %v3246_v14  ;;  %v2869_v52 = vrot.slane %v5137_v45, 1  ;;  %v6994_v14 = vld [vmem:[#allocation52_spill] sm:$0xff] }
 0x209   : > { %v2867_v5 = vrot.slane %v2231_v58, 1  ;;  %v5138_v54 = vpop.f32.mrb[110].mxu0 }
 0x20a   : > { %v2870_v3 = vrot.slane %v5138_v54, 1  ;;  %v2234_v16 = vpop.f32.mrb[111].mxu0  ;;  %v3292_v36 = vpack.c.bf16 %v3249_v21, %v3248_v15 }
 0x20b   : > { %v2907_v53 = vsel %vm2887_vm5, %v2866_v51, %v2867_v5  ;;  %v2868_v35 = vrot.slane %v2234_v16, 1  ;;  %5196 = vmatmul.mubr.msk.bf16.gmra.mrb[100].mxu1 %vm3320_vm6, %v3291_v22  ;;  %v6995_v16 = vld [vmem:[#allocation51_spill] sm:$0xff] }
 0x20c   : > { %v3187_v24 = vadd.f32 %v2907_v53, %v6988_v37  ;;  %v2904_v18 = vsel %vm2887_vm5, %v2869_v52, %v2870_v3  ;;  %5199 = vmatprep.mubr.msk.bf16.mxu1 %vm3320_vm6, %v3292_v36 }
 0x20d   : > { %v3190_v31 = vadd.f32 %v2904_v18, %v6989_v25  ;;  %v2905_v33 = vsel %vm2887_vm5, %v2868_v35, %v2869_v52  ;;  %v2906_v62 = vsel %vm2887_vm5, %v2867_v5, %v2868_v35 }
 0x20e   : > { %v3251_v61 = vmax.f32 %v3187_v24, 0.0  ;;  %v3188_v55 = vadd.f32 %v2906_v62, %v6990_v23  ;;  %v3189_v13 = vadd.f32 %v2905_v33, %v6991_v39 }
 0x20f   : > { %v5141_v59 = vpop.f32.mrb[112].mxu0  ;;  %v3254_v20 = vmax.f32 %v3190_v31, 0.0  ;;  %v6996_v31 = vld [vmem:[#allocation53_spill] sm:$0xff] }
 0x210   : > { %v3252_v42 = vmax.f32 %v3188_v55, 0.0  ;;  %v3253_v48 = vmax.f32 %v3189_v13, 0.0  ;;  %v2247_v30 = vpop.f32.mrb[113].mxu0  ;;  %v3293_v8 = vpack.c.bf16 %v3251_v61, %v3250_v49  ;;  %v2873_v44 = vrot.slane %v5141_v59, 1 }
 0x211   : > { %v2871_v34 = vrot.slane %v2247_v30, 1  ;;  %v5142_v28 = vpop.f32.mrb[114].mxu0  ;;  %v480_v59 = vadd.s32 504, %v6054_v40 }
 0x212   : > { %v2874_v6 = vrot.slane %v5142_v28, 1  ;;  %v2250_v50 = vpop.f32.mrb[115].mxu0  ;;  %v3294_v51 = vpack.c.bf16 %v3253_v48, %v3252_v42 }
 0x213   : > { %v2903_v19 = vsel %vm2887_vm5, %v2870_v3, %v2871_v34  ;;  %v2872_v29 = vrot.slane %v2250_v50, 1  ;;  %5200 = vmatmul.mubr.msk.bf16.gmra.mrb[104].mxu1 %vm3320_vm6, %v3293_v8 }
 0x214   : > { %v3127_v56 = vsel %vm2806_vm9, 0.0, %v2903_v19  ;;  %v2900_v43 = vsel %vm2887_vm5, %v2873_v44, %v2874_v6  ;;  %5203 = vmatprep.mubr.msk.bf16.mxu1 %vm3320_vm6, %v3294_v51  ;;  %v926_v19 = vand.u32 127, %v480_v59 }
 0x215   : > { %v3191_v10 = vadd.f32 %v3127_v56, %v6992_v32  ;;  %v3194_v38 = vadd.f32 %v2900_v43, %v6277_v7  ;;  %v2901_v57 = vsel %vm2887_vm5, %v2872_v29, %v2873_v44  ;;  %v2902_v1 = vsel %vm2887_vm5, %v2871_v34, %v2872_v29  ;;  %v6998_v43 = vld [vmem:[#allocation55_spill] sm:$0xff] }
 0x216   : > { %v3192_v0 = vadd.f32 %v2902_v1, %v6993_v2  ;;  %v3193_v11 = vadd.f32 %v2901_v57, %v6994_v14  ;;  %vm6548_vm10 = vcmp.eq.s32.totalorder %v926_v19, 127 }
 0x217   : > { %v3255_v26 = vmax.f32 %v3191_v10, 0.0  ;;  %v5145_v41 = vpop.f32.mrb[116].mxu0  ;;  %v3258_v18 = vmax.f32 %v3194_v38, 0.0 }
 0x218   : > { %v3256_v63 = vmax.f32 %v3192_v0, 0.0  ;;  %v3257_v45 = vmax.f32 %v3193_v11, 0.0  ;;  %v2877_v15 = vrot.slane %v5145_v41, 1  ;;  %v2263_v21 = vpop.f32.mrb[117].mxu0 }
 0x219   : > { %v2875_v58 = vrot.slane %v2263_v21, 1  ;;  %v5146_v22 = vpop.f32.mrb[118].mxu0  ;;  %v3295_v7 = vpack.c.bf16 %v3255_v26, %v3254_v20  ;;  %v7001_v21 = vld [vmem:[#allocation56_spill] sm:$0xff] }
 0x21a   : > { %v2878_v5 = vrot.slane %v5146_v22, 1  ;;  %v2266_v54 = vpop.f32.mrb[119].mxu0  ;;  %v3296_v9 = vpack.c.bf16 %v3257_v45, %v3256_v63 }
 0x21b   : > { %v2899_v52 = vsel %vm2887_vm5, %v2874_v6, %v2875_v58  ;;  %v2876_v3 = vrot.slane %v2266_v54, 1  ;;  %5204 = vmatmul.mubr.msk.bf16.gmra.mrb[108].mxu1 %vm3320_vm6, %v3295_v7  ;;  %v7002_v54 = vld [vmem:[#allocation59_spill] sm:$0xff] }
 0x21c   : > { %v3195_v36 = vadd.f32 %v2899_v52, %v6995_v16  ;;  %v2896_v53 = vsel %vm2887_vm5, %v2877_v15, %v2878_v5  ;;  %5207 = vmatprep.mubr.msk.bf16.mxu1 %vm3320_vm6, %v3296_v9 }
 0x21d   : > { %v3198_v35 = vadd.f32 %v2896_v53, %v6293_v27  ;;  %v2897_v37 = vsel %vm2887_vm5, %v2876_v3, %v2877_v15  ;;  %v2898_v24 = vsel %vm2887_vm5, %v2875_v58, %v2876_v3 }
 0x21e   : > { %v3259_v25 = vmax.f32 %v3195_v36, 0.0  ;;  %v3196_v33 = vadd.f32 %v2898_v24, %v6996_v31  ;;  %v3197_v62 = vadd.f32 %v2897_v37, %v6295_v47  ;;  %v6997_v47 = vld [vmem:[#allocation54_spill] sm:$0xff]  ;;  %v7005_v37 = vld [vmem:[#allocation60_spill] sm:$0xff] }
 0x21f   : > { %v5149_v12 = vpop.f32.mrb[120].mxu0  ;;  %v3262_v29 = vmax.f32 %v3198_v35, 0.0  ;;  %v7003_v36 = vld [vmem:[#allocation58_spill] sm:$0xff] }
 0x220   : > { %v3260_v49 = vmax.f32 %v3196_v33, 0.0  ;;  %v3261_v61 = vmax.f32 %v3197_v62, 0.0  ;;  %v2881_v23 = vrot.slane %v5149_v12, 1  ;;  %v2279_v55 = vpop.f32.mrb[121].mxu0  ;;  %v3297_v39 = vpack.c.bf16 %v3259_v25, %v3258_v18 }
 0x221   : > { %v2879_v13 = vrot.slane %v2279_v55, 1  ;;  %v5150_v27 = vpop.f32.mrb[122].mxu0 }
 0x222   : > { %v2882_v42 = vrot.slane %v5150_v27, 1  ;;  %v2282_v48 = vpop.f32.mrb[123].mxu0  ;;  %v3298_v30 = vpack.c.bf16 %v3261_v61, %v3260_v49 }
 0x223   : > { %v2895_v8 = vsel %vm2887_vm5, %v2878_v5, %v2879_v13  ;;  %v2880_v34 = vrot.slane %v2282_v48, 1  ;;  %5208 = vmatmul.mubr.msk.bf16.gmra.mrb[112].mxu1 %vm3320_vm6, %v3297_v39 }
 0x224   : > { %v3199_v28 = vadd.f32 %v2895_v8, %v6997_v47  ;;  %v2892_v44 = vsel %vm2887_vm5, %v2881_v23, %v2882_v42  ;;  %5211 = vmatprep.mubr.msk.bf16.mxu1 %vm3320_vm6, %v3298_v30 }
 0x225   : > { %v3202_v6 = vadd.f32 %v2892_v44, %v6309_v4  ;;  %v2893_v50 = vsel %vm2887_vm5, %v2880_v34, %v2881_v23  ;;  %v2894_v51 = vsel %vm2887_vm5, %v2879_v13, %v2880_v34  ;;  %v7006_v23 = vld [vmem:[#allocation9_spill] sm:$0xff] }
 0x226   : > { %v3263_v56 = vmax.f32 %v3199_v28, 0.0  ;;  %v3200_v32 = vadd.f32 %v2894_v51, %v6998_v43  ;;  %v3201_v10 = vadd.f32 %v2893_v50, %v6311_v60  ;;  %v7007_v55 = vunpack.c.l.bf16 %v7006_v23  ;;  %v7012_v51 = vld [vmem:[#allocation11_spill] sm:$0xff] }
 0x227   : > { %v5153_v38 = vpop.f32.mrb[124].mxu0  ;;  %v3266_v60 = vmax.f32 %v3202_v6, 0.0  ;;  %v7008_v13 = vunpack.c.h.bf16 %v7006_v23  ;;  %v7013_v19 = vunpack.c.l.bf16 %v7012_v51  ;;  %v7030_v23 = vld [vmem:[#allocation17_spill] sm:$0xff] }
 0x228   : > { %v3264_v57 = vmax.f32 %v3200_v32, 0.0  ;;  %v3265_v1 = vmax.f32 %v3201_v10, 0.0  ;;  %v2885_v2 = vrot.slane %v5153_v38, 1  ;;  %v2295_v0 = vpop.f32.mrb[125].mxu0  ;;  %v3299_v14 = vpack.c.bf16 %v3263_v56, %v3262_v29  ;;  %v7015_v10 = vld [vmem:[#allocation10_spill] sm:$0xff] }
 0x229   : > { %v2883_v4 = vrot.slane %v2295_v0, 1  ;;  %v5154_v11 = vpop.f32.mrb[126].mxu0  ;;  %v7014_v56 = vunpack.c.h.bf16 %v7012_v51  ;;  %v7016_v38 = vunpack.c.l.bf16 %v7015_v10  ;;  %v7036_v51 = vld [vmem:[#allocation19_spill] sm:$0xff] }
 0x22a   : > { %v2886_v26 = vrot.slane %v5154_v11, 1  ;;  %v2298_v41 = vpop.f32.mrb[127].mxu0  ;;  %v3300_v63 = vpack.c.bf16 %v3265_v1, %v3264_v57  ;;  %v7017_v1 = vunpack.c.h.bf16 %v7015_v10  ;;  %v7039_v10 = vld [vmem:[#allocation18_spill] sm:$0xff] }
 0x22b   : > { %v2891_v45 = vsel %vm2887_vm5, %v2882_v42, %v2883_v4  ;;  %v2884_v15 = vrot.slane %v2298_v41, 1  ;;  %5212 = vmatmul.mubr.msk.bf16.gmra.mrb[116].mxu1 %vm3320_vm6, %v3299_v14  ;;  %v7009_v42 = vld [vmem:[#allocation8_spill] sm:$0xff] }
 0x22c   : > { %v3203_v58 = vadd.f32 %v2891_v45, %v7001_v21  ;;  %v2888_v22 = vsel %vm2887_vm5, %v2885_v2, %v2886_v26  ;;  %v2951_v7 = vsel %vm2887_vm5, %v2886_v26, %v2823_v17  ;;  %5215 = vmatprep.mubr.msk.bf16.mxu1 %vm3320_vm6, %v3300_v63  ;;  %v7010_v48 = vunpack.c.l.bf16 %v7009_v42  ;;  %v7018_v26 = vld [vmem:[#allocation13_spill] sm:$0xff]  ;;  %v7021_v21 = vld [vmem:[#allocation12_spill] sm:$0xff] }
 0x22d   : > { %v3143_v5 = vsel %vm6548_vm10, 0.0, %v2951_v7  ;;  %v3206_v9 = vadd.f32 %v2888_v22, %v7002_v54  ;;  %v2889_v52 = vsel %vm2887_vm5, %v2884_v15, %v2885_v2  ;;  %v2890_v3 = vsel %vm2887_vm5, %v2883_v4, %v2884_v15 }
 0x22e   : > { %v3267_v16 = vmax.f32 %v3203_v58, 0.0  ;;  %v3207_v53 = vadd.f32 %v3143_v5, %v7003_v36  ;;  %v3204_v35 = vadd.f32 %v2890_v3, %v7004_v46  ;;  %v3205_v17 = vadd.f32 %v2889_v52, %v7005_v37  ;;  %v7024_v36 = vld [vmem:[#allocation15_spill] sm:$0xff] }
 0x22f   : > { %v3270_v24 = vmax.f32 %v3206_v9, 0.0  ;;  %v7011_v8 = vunpack.c.h.bf16 %v7009_v42  ;;  %v7019_v41 = vunpack.c.l.bf16 %v7018_v26  ;;  %v7020_v45 = vunpack.c.h.bf16 %v7018_v26  ;;  %v7033_v42 = vld [vmem:[#allocation16_spill] sm:$0xff]  ;;  %v7042_v26 = vld [vmem:[#allocation21_spill] sm:$0xff] }
 0x230   : > { %v3271_v18 = vmax.f32 %v3207_v53, 0.0  ;;  %v3268_v25 = vmax.f32 %v3204_v35, 0.0  ;;  %v3269_v31 = vmax.f32 %v3205_v17, 0.0  ;;  %v3301_v33 = vpack.c.bf16 %v3267_v16, %v3266_v60 }
 0x231   : > { %v7022_v58 = vunpack.c.l.bf16 %v7021_v21  ;;  %v7023_v7 = vunpack.c.h.bf16 %v7021_v21  ;;  %v7025_v53 = vunpack.c.l.bf16 %v7024_v36  ;;  %v7026_v35 = vunpack.c.h.bf16 %v7024_v36  ;;  %v7045_v21 = vld [vmem:[#allocation20_spill] sm:$0xff]  ;;  %v7048_v36 = vld [vmem:[#allocation23_spill] sm:$0xff] }
 0x232   : > { %v3302_v62 = vpack.c.bf16 %v3269_v31, %v3268_v25  ;;  %v3303_v12 = vpack.c.bf16 %v3271_v18, %v3270_v24  ;;  %v7027_v24 = vld [vmem:[#allocation14_spill] sm:$0xff] }
 0x233   : > { %5216 = vmatmul.mubr.msk.bf16.gmra.mrb[120].mxu1 %vm3320_vm6, %v3301_v33  ;;  %v7028_v18 = vunpack.c.l.bf16 %v7027_v24  ;;  %v7029_v31 = vunpack.c.h.bf16 %v7027_v24  ;;  %v7051_v24 = vld [vmem:[#allocation22_spill] sm:$0xff] }
 0x234   : > { %5219 = vmatprep.mubr.msk.bf16.mxu1 %vm3320_vm6, %v3302_v62 }
 0x23b   : > { %5220 = vmatmul.mubr.msk.bf16.gmra.mrb[124].mxu1 %vm3320_vm6, %v3303_v12 }
 0x295   : > { %v5161_v40 = vpop.f32.mrb[64].mxu1 }
 0x296   : > { %v3451_v49 = vpop.f32.mrb[65].mxu1  ;;  %v3708_v39 = vadd.f32 %v5161_v40, %v7007_v55  ;;  %v7031_v55 = vunpack.c.l.bf16 %v7030_v23 }
 0x297   : > { %v5162_v61 = vpop.f32.mrb[66].mxu1  ;;  %v3706_v30 = vadd.f32 %v7010_v48, %v3451_v49  ;;  %v7034_v48 = vunpack.c.l.bf16 %v7033_v42 }
 0x298   : > { %v3709_v27 = vadd.f32 %v5162_v61, %v7008_v13  ;;  %v3454_v59 = vpop.f32.mrb[67].mxu1  ;;  %v7032_v13 = vunpack.c.h.bf16 %v7030_v23  ;;  %v7054_v23 = vld [vmem:[#allocation25_spill] sm:$0xff] }
 0x299   : > { %v3707_v34 = vadd.f32 %v7011_v8, %v3454_v59  ;;  %v7035_v8 = vunpack.c.h.bf16 %v7033_v42  ;;  %v7057_v42 = vld [vmem:[#allocation24_spill] sm:$0xff] }
 0x29a   : > { %v4547_v47 = vpack.c.bf16 %v3709_v27, %v3708_v39 }
 0x29b   : > { %v4542_v28 = vpack.c.bf16 %v3707_v34, %v3706_v30 }
 0x29c   : > { %4730 = vst [vmem:[%s6586_s20 + $0x8] sm:$0xff] %v4547_v47  }
 0x29d   : > { %4543 = vst [vmem:[%s6586_s20] sm:$0xff] %v4542_v28   ;;  %v5165_v44 = vpop.f32.mrb[68].mxu1 }
 0x29e   : > { %v3467_v6 = vpop.f32.mrb[69].mxu1  ;;  %v3712_v29 = vadd.f32 %v5165_v44, %v7013_v19  ;;  %v7037_v19 = vunpack.c.l.bf16 %v7036_v51 }
 0x29f   : > { %v5166_v50 = vpop.f32.mrb[70].mxu1  ;;  %v3710_v57 = vadd.f32 %v7016_v38, %v3467_v6  ;;  %v7040_v38 = vunpack.c.l.bf16 %v7039_v10 }
 0x2a0   : > { %v3713_v43 = vadd.f32 %v5166_v50, %v7014_v56  ;;  %v3470_v32 = vpop.f32.mrb[71].mxu1  ;;  %v7038_v56 = vunpack.c.h.bf16 %v7036_v51  ;;  %v7060_v51 = vld [vmem:[#allocation27_spill] sm:$0xff] }
 0x2a1   : > { %v3711_v2 = vadd.f32 %v7017_v1, %v3470_v32  ;;  %v7041_v1 = vunpack.c.h.bf16 %v7039_v10  ;;  %v7063_v10 = vld [vmem:[#allocation26_spill] sm:$0xff] }
 0x2a2   : > { %v4557_v0 = vpack.c.bf16 %v3713_v43, %v3712_v29 }
 0x2a3   : > { %v4552_v14 = vpack.c.bf16 %v3711_v2, %v3710_v57 }
 0x2a4   : > { %4732 = vst [vmem:[%s6586_s20 + $0x18] sm:$0xff] %v4557_v0  }
 0x2a5   : > { %4731 = vst [vmem:[%s6586_s20 + $0x10] sm:$0xff] %v4552_v14   ;;  %v5169_v4 = vpop.f32.mrb[72].mxu1 }
 0x2a6   : > { %v3483_v11 = vpop.f32.mrb[73].mxu1  ;;  %v3716_v63 = vadd.f32 %v5169_v4, %v7019_v41  ;;  %v7043_v41 = vunpack.c.l.bf16 %v7042_v26 }
 0x2a7   : > { %v5170_v20 = vpop.f32.mrb[74].mxu1  ;;  %v3714_v22 = vadd.f32 %v7022_v58, %v3483_v11  ;;  %v7046_v58 = vunpack.c.l.bf16 %v7045_v21 }
 0x2a8   : > { %v3717_v15 = vadd.f32 %v5170_v20, %v7020_v45  ;;  %v3486_v60 = vpop.f32.mrb[75].mxu1  ;;  %v7044_v45 = vunpack.c.h.bf16 %v7042_v26  ;;  %v7066_v26 = vld [vmem:[#allocation29_spill] sm:$0xff] }
 0x2a9   : > { %v3715_v5 = vadd.f32 %v7023_v7, %v3486_v60  ;;  %v7047_v7 = vunpack.c.h.bf16 %v7045_v21  ;;  %v7069_v21 = vld [vmem:[#allocation28_spill] sm:$0xff] }
 0x2aa   : > { %v4567_v54 = vpack.c.bf16 %v3717_v15, %v3716_v63 }
 0x2ab   : > { %v4562_v9 = vpack.c.bf16 %v3715_v5, %v3714_v22 }
 0x2ac   : > { %4734 = vst [vmem:[%s6586_s20 + $0x28] sm:$0xff] %v4567_v54  }
 0x2ad   : > { %4733 = vst [vmem:[%s6586_s20 + $0x20] sm:$0xff] %v4562_v9  }
 0x2ae   : > { %v5173_v52 = vpop.f32.mrb[76].mxu1 }
 0x2af   : > { %v3499_v3 = vpop.f32.mrb[77].mxu1  ;;  %v3720_v46 = vadd.f32 %v5173_v52, %v7025_v53  ;;  %v7049_v53 = vunpack.c.l.bf16 %v7048_v36 }
 0x2b0   : > { %v5174_v16 = vpop.f32.mrb[78].mxu1  ;;  %v3718_v25 = vadd.f32 %v7028_v18, %v3499_v3  ;;  %v7052_v18 = vunpack.c.l.bf16 %v7051_v24 }
 0x2b1   : > { %v3721_v37 = vadd.f32 %v5174_v16, %v7026_v35  ;;  %v3502_v17 = vpop.f32.mrb[79].mxu1  ;;  %v7050_v35 = vunpack.c.h.bf16 %v7048_v36  ;;  %v7072_v36 = vld [vmem:[#allocation31_spill] sm:$0xff] }
 0x2b2   : > { %v3719_v33 = vadd.f32 %v7029_v31, %v3502_v17  ;;  %v7053_v31 = vunpack.c.h.bf16 %v7051_v24  ;;  %v7075_v24 = vld [vmem:[#allocation30_spill] sm:$0xff] }
 0x2b3   : > { %v4577_v62 = vpack.c.bf16 %v3721_v37, %v3720_v46 }
 0x2b4   : > { %v4572_v12 = vpack.c.bf16 %v3719_v33, %v3718_v25 }
 0x2b5   : > { %4736 = vst [vmem:[%s6586_s20 + $0x38] sm:$0xff] %v4577_v62  }
 0x2b6   : > { %4735 = vst [vmem:[%s6586_s20 + $0x30] sm:$0xff] %v4572_v12   ;;  %v5177_v40 = vpop.f32.mrb[80].mxu1 }
 0x2b7   : > { %v3515_v49 = vpop.f32.mrb[81].mxu1  ;;  %v3724_v39 = vadd.f32 %v5177_v40, %v7031_v55  ;;  %v7055_v55 = vunpack.c.l.bf16 %v7054_v23 }
 0x2b8   : > { %v5178_v61 = vpop.f32.mrb[82].mxu1  ;;  %v3722_v30 = vadd.f32 %v7034_v48, %v3515_v49  ;;  %v7058_v48 = vunpack.c.l.bf16 %v7057_v42 }
 0x2b9   : > { %v3725_v27 = vadd.f32 %v5178_v61, %v7032_v13  ;;  %v3518_v59 = vpop.f32.mrb[83].mxu1  ;;  %v7056_v13 = vunpack.c.h.bf16 %v7054_v23  ;;  %v7078_v23 = vld [vmem:[#allocation33_spill] sm:$0xff] }
 0x2ba   : > { %v3723_v34 = vadd.f32 %v7035_v8, %v3518_v59  ;;  %v7059_v8 = vunpack.c.h.bf16 %v7057_v42  ;;  %v7081_v42 = vld [vmem:[#allocation32_spill] sm:$0xff] }
 0x2bb   : > { %v4587_v47 = vpack.c.bf16 %v3725_v27, %v3724_v39 }
 0x2bc   : > { %v4582_v28 = vpack.c.bf16 %v3723_v34, %v3722_v30 }
 0x2bd   : > { %4738 = vst [vmem:[%s6586_s20 + $0x48] sm:$0xff] %v4587_v47  }
 0x2be   : > { %4737 = vst [vmem:[%s6586_s20 + $0x40] sm:$0xff] %v4582_v28   ;;  %v5181_v44 = vpop.f32.mrb[84].mxu1 }
 0x2bf   : > { %v3531_v6 = vpop.f32.mrb[85].mxu1  ;;  %v3728_v29 = vadd.f32 %v5181_v44, %v7037_v19  ;;  %v7061_v19 = vunpack.c.l.bf16 %v7060_v51 }
 0x2c0   : > { %v5182_v50 = vpop.f32.mrb[86].mxu1  ;;  %v3726_v57 = vadd.f32 %v7040_v38, %v3531_v6  ;;  %v7064_v38 = vunpack.c.l.bf16 %v7063_v10 }
 0x2c1   : > { %v3729_v43 = vadd.f32 %v5182_v50, %v7038_v56  ;;  %v3534_v32 = vpop.f32.mrb[87].mxu1  ;;  %v7062_v56 = vunpack.c.h.bf16 %v7060_v51  ;;  %v7084_v51 = vld [vmem:[#allocation35_spill] sm:$0xff] }
 0x2c2   : > { %v3727_v2 = vadd.f32 %v7041_v1, %v3534_v32  ;;  %v7065_v1 = vunpack.c.h.bf16 %v7063_v10  ;;  %v7087_v10 = vld [vmem:[#allocation34_spill] sm:$0xff] }
 0x2c3   : > { %v4597_v0 = vpack.c.bf16 %v3729_v43, %v3728_v29 }
 0x2c4   : > { %v4592_v14 = vpack.c.bf16 %v3727_v2, %v3726_v57 }
 0x2c5   : > { %4740 = vst [vmem:[%s6586_s20 + $0x58] sm:$0xff] %v4597_v0  }
 0x2c6   : > { %4739 = vst [vmem:[%s6586_s20 + $0x50] sm:$0xff] %v4592_v14   ;;  %v5185_v4 = vpop.f32.mrb[88].mxu1 }
 0x2c7   : > { %v3547_v11 = vpop.f32.mrb[89].mxu1  ;;  %v3732_v63 = vadd.f32 %v5185_v4, %v7043_v41  ;;  %v7067_v41 = vunpack.c.l.bf16 %v7066_v26 }
 0x2c8   : > { %v5186_v20 = vpop.f32.mrb[90].mxu1  ;;  %v3730_v22 = vadd.f32 %v7046_v58, %v3547_v11  ;;  %v7070_v58 = vunpack.c.l.bf16 %v7069_v21 }
 0x2c9   : > { %v3733_v15 = vadd.f32 %v5186_v20, %v7044_v45  ;;  %v3550_v60 = vpop.f32.mrb[91].mxu1  ;;  %v7068_v45 = vunpack.c.h.bf16 %v7066_v26  ;;  %v7090_v26 = vld [vmem:[#allocation37_spill] sm:$0xff] }
 0x2ca   : > { %v3731_v5 = vadd.f32 %v7047_v7, %v3550_v60  ;;  %v7071_v7 = vunpack.c.h.bf16 %v7069_v21  ;;  %v7093_v21 = vld [vmem:[#allocation36_spill] sm:$0xff] }
 0x2cb   : > { %v4607_v54 = vpack.c.bf16 %v3733_v15, %v3732_v63 }
 0x2cc   : > { %v4602_v9 = vpack.c.bf16 %v3731_v5, %v3730_v22 }
 0x2cd   : > { %4742 = vst [vmem:[%s6586_s20 + $0x68] sm:$0xff] %v4607_v54  }
 0x2ce   : > { %4741 = vst [vmem:[%s6586_s20 + $0x60] sm:$0xff] %v4602_v9   ;;  %v5189_v52 = vpop.f32.mrb[92].mxu1 }
 0x2cf   : > { %v3563_v3 = vpop.f32.mrb[93].mxu1  ;;  %v3736_v46 = vadd.f32 %v5189_v52, %v7049_v53  ;;  %v7073_v53 = vunpack.c.l.bf16 %v7072_v36 }
 0x2d0   : > { %v5190_v16 = vpop.f32.mrb[94].mxu1  ;;  %v3734_v25 = vadd.f32 %v7052_v18, %v3563_v3  ;;  %v7076_v18 = vunpack.c.l.bf16 %v7075_v24 }
 0x2d1   : > { %v3737_v37 = vadd.f32 %v5190_v16, %v7050_v35  ;;  %v3566_v17 = vpop.f32.mrb[95].mxu1  ;;  %v7074_v35 = vunpack.c.h.bf16 %v7072_v36  ;;  %v7096_v36 = vld [vmem:[#allocation39_spill] sm:$0xff] }
 0x2d2   : > { %v3735_v33 = vadd.f32 %v7053_v31, %v3566_v17  ;;  %v7077_v31 = vunpack.c.h.bf16 %v7075_v24  ;;  %v7099_v24 = vld [vmem:[#allocation38_spill] sm:$0xff] }
 0x2d3   : > { %v4617_v62 = vpack.c.bf16 %v3737_v37, %v3736_v46 }
 0x2d4   : > { %v4612_v12 = vpack.c.bf16 %v3735_v33, %v3734_v25 }
 0x2d5   : > { %4744 = vst [vmem:[%s6586_s20 + $0x78] sm:$0xff] %v4617_v62  }
 0x2d6   : > { %4743 = vst [vmem:[%s6586_s20 + $0x70] sm:$0xff] %v4612_v12   ;;  %v5193_v40 = vpop.f32.mrb[96].mxu1 }
 0x2d7   : > { %v3579_v49 = vpop.f32.mrb[97].mxu1  ;;  %v3740_v39 = vadd.f32 %v5193_v40, %v7055_v55  ;;  %v7079_v55 = vunpack.c.l.bf16 %v7078_v23 }
 0x2d8   : > { %v5194_v61 = vpop.f32.mrb[98].mxu1  ;;  %v3738_v30 = vadd.f32 %v7058_v48, %v3579_v49  ;;  %v7082_v48 = vunpack.c.l.bf16 %v7081_v42 }
 0x2d9   : > { %v3741_v27 = vadd.f32 %v5194_v61, %v7056_v13  ;;  %v3582_v59 = vpop.f32.mrb[99].mxu1  ;;  %v7080_v13 = vunpack.c.h.bf16 %v7078_v23 }
 0x2da   : > { %v3739_v34 = vadd.f32 %v7059_v8, %v3582_v59  ;;  %v7083_v8 = vunpack.c.h.bf16 %v7081_v42 }
 0x2db   : > { %v4627_v47 = vpack.c.bf16 %v3741_v27, %v3740_v39 }
 0x2dc   : > { %v4622_v28 = vpack.c.bf16 %v3739_v34, %v3738_v30 }
 0x2dd   : > { %4746 = vst [vmem:[%s6586_s20 + $0x88] sm:$0xff] %v4627_v47  }
 0x2de   : > { %4745 = vst [vmem:[%s6586_s20 + $0x80] sm:$0xff] %v4622_v28   ;;  %v5197_v44 = vpop.f32.mrb[100].mxu1 }
 0x2df   : > { %v3595_v6 = vpop.f32.mrb[101].mxu1  ;;  %v3744_v29 = vadd.f32 %v5197_v44, %v7061_v19  ;;  %v7085_v19 = vunpack.c.l.bf16 %v7084_v51 }
 0x2e0   : > { %v5198_v50 = vpop.f32.mrb[102].mxu1  ;;  %v3742_v57 = vadd.f32 %v7064_v38, %v3595_v6  ;;  %v7088_v38 = vunpack.c.l.bf16 %v7087_v10 }
 0x2e1   : > { %v3745_v43 = vadd.f32 %v5198_v50, %v7062_v56  ;;  %v3598_v32 = vpop.f32.mrb[103].mxu1  ;;  %v7086_v56 = vunpack.c.h.bf16 %v7084_v51 }
 0x2e2   : > { %v3743_v2 = vadd.f32 %v7065_v1, %v3598_v32  ;;  %v7089_v1 = vunpack.c.h.bf16 %v7087_v10 }
 0x2e3   : > { %v4637_v0 = vpack.c.bf16 %v3745_v43, %v3744_v29 }
 0x2e4   : > { %v4632_v14 = vpack.c.bf16 %v3743_v2, %v3742_v57 }
 0x2e5   : > { %4748 = vst [vmem:[%s6586_s20 + $0x98] sm:$0xff] %v4637_v0  }
 0x2e6   : > { %4747 = vst [vmem:[%s6586_s20 + $0x90] sm:$0xff] %v4632_v14   ;;  %v5201_v4 = vpop.f32.mrb[104].mxu1 }
 0x2e7   : > { %v3611_v11 = vpop.f32.mrb[105].mxu1  ;;  %v3748_v63 = vadd.f32 %v5201_v4, %v7067_v41  ;;  %v7091_v41 = vunpack.c.l.bf16 %v7090_v26 }
 0x2e8   : > { %v5202_v20 = vpop.f32.mrb[106].mxu1  ;;  %v3746_v22 = vadd.f32 %v7070_v58, %v3611_v11  ;;  %v7094_v58 = vunpack.c.l.bf16 %v7093_v21 }
 0x2e9   : > { %v3749_v15 = vadd.f32 %v5202_v20, %v7068_v45  ;;  %v3614_v60 = vpop.f32.mrb[107].mxu1  ;;  %v7092_v45 = vunpack.c.h.bf16 %v7090_v26 }
 0x2ea   : > { %v3747_v5 = vadd.f32 %v7071_v7, %v3614_v60  ;;  %v7095_v7 = vunpack.c.h.bf16 %v7093_v21 }
 0x2eb   : > { %v4647_v54 = vpack.c.bf16 %v3749_v15, %v3748_v63 }
 0x2ec   : > { %v4642_v9 = vpack.c.bf16 %v3747_v5, %v3746_v22 }
 0x2ed   : > { %4750 = vst [vmem:[%s6586_s20 + $0xa8] sm:$0xff] %v4647_v54  }
 0x2ee   : > { %4749 = vst [vmem:[%s6586_s20 + $0xa0] sm:$0xff] %v4642_v9   ;;  %v5205_v52 = vpop.f32.mrb[108].mxu1 }
 0x2ef   : > { %v3627_v3 = vpop.f32.mrb[109].mxu1  ;;  %v3752_v46 = vadd.f32 %v5205_v52, %v7073_v53  ;;  %v7097_v53 = vunpack.c.l.bf16 %v7096_v36 }
 0x2f0   : > { %v5206_v16 = vpop.f32.mrb[110].mxu1  ;;  %v3750_v25 = vadd.f32 %v7076_v18, %v3627_v3  ;;  %v7100_v18 = vunpack.c.l.bf16 %v7099_v24 }
 0x2f1   : > { %v3753_v37 = vadd.f32 %v5206_v16, %v7074_v35  ;;  %v3630_v17 = vpop.f32.mrb[111].mxu1  ;;  %v7098_v35 = vunpack.c.h.bf16 %v7096_v36 }
 0x2f2   : > { %v3751_v33 = vadd.f32 %v7077_v31, %v3630_v17  ;;  %v7101_v31 = vunpack.c.h.bf16 %v7099_v24 }
 0x2f3   : > { %v4657_v62 = vpack.c.bf16 %v3753_v37, %v3752_v46 }
 0x2f4   : > { %v4652_v12 = vpack.c.bf16 %v3751_v33, %v3750_v25 }
 0x2f5   : > { %4752 = vst [vmem:[%s6586_s20 + $0xb8] sm:$0xff] %v4657_v62  }
 0x2f6   : > { %4751 = vst [vmem:[%s6586_s20 + $0xb0] sm:$0xff] %v4652_v12   ;;  %v5209_v40 = vpop.f32.mrb[112].mxu1 }
 0x2f7   : > { %v3643_v49 = vpop.f32.mrb[113].mxu1  ;;  %v3756_v39 = vadd.f32 %v5209_v40, %v7079_v55 }
 0x2f8   : > { %v5210_v61 = vpop.f32.mrb[114].mxu1  ;;  %v3754_v30 = vadd.f32 %v7082_v48, %v3643_v49 }
 0x2f9   : > { %v3757_v27 = vadd.f32 %v5210_v61, %v7080_v13  ;;  %v3646_v59 = vpop.f32.mrb[115].mxu1 }
 0x2fa   : > { %v3755_v34 = vadd.f32 %v7083_v8, %v3646_v59 }
 0x2fb   : > { %v4667_v47 = vpack.c.bf16 %v3757_v27, %v3756_v39 }
 0x2fc   : > { %v4662_v28 = vpack.c.bf16 %v3755_v34, %v3754_v30 }
 0x2fd   : > { %4754 = vst [vmem:[%s6586_s20 + $0xc8] sm:$0xff] %v4667_v47  }
 0x2fe   : > { %4753 = vst [vmem:[%s6586_s20 + $0xc0] sm:$0xff] %v4662_v28   ;;  %v5213_v44 = vpop.f32.mrb[116].mxu1 }
 0x2ff   : > { %v3659_v6 = vpop.f32.mrb[117].mxu1  ;;  %v3760_v29 = vadd.f32 %v5213_v44, %v7085_v19 }
 0x300   : > { %v5214_v50 = vpop.f32.mrb[118].mxu1  ;;  %v3758_v57 = vadd.f32 %v7088_v38, %v3659_v6 }
 0x301   : > { %v3761_v43 = vadd.f32 %v5214_v50, %v7086_v56  ;;  %v3662_v32 = vpop.f32.mrb[119].mxu1 }
 0x302   : > { %v3759_v2 = vadd.f32 %v7089_v1, %v3662_v32 }
 0x303   : > { %v4677_v0 = vpack.c.bf16 %v3761_v43, %v3760_v29 }
 0x304   : > { %v4672_v14 = vpack.c.bf16 %v3759_v2, %v3758_v57 }
 0x305   : > { %4756 = vst [vmem:[%s6586_s20 + $0xd8] sm:$0xff] %v4677_v0  }
 0x306   : > { %4755 = vst [vmem:[%s6586_s20 + $0xd0] sm:$0xff] %v4672_v14   ;;  %v5217_v4 = vpop.f32.mrb[120].mxu1 }
 0x307   : > { %v3675_v11 = vpop.f32.mrb[121].mxu1  ;;  %v3764_v63 = vadd.f32 %v5217_v4, %v7091_v41 }
 0x308   : > { %v5218_v20 = vpop.f32.mrb[122].mxu1  ;;  %v3762_v22 = vadd.f32 %v7094_v58, %v3675_v11 }
 0x309   : > { %v3765_v15 = vadd.f32 %v5218_v20, %v7092_v45  ;;  %v3678_v60 = vpop.f32.mrb[123].mxu1 }
 0x30a   : > { %v3763_v5 = vadd.f32 %v7095_v7, %v3678_v60 }
 0x30b   : > { %v4687_v54 = vpack.c.bf16 %v3765_v15, %v3764_v63 }
 0x30c   : > { %v4682_v9 = vpack.c.bf16 %v3763_v5, %v3762_v22 }
 0x30d   : > { %4758 = vst [vmem:[%s6586_s20 + $0xe8] sm:$0xff] %v4687_v54  }
 0x30e   : > { %4757 = vst [vmem:[%s6586_s20 + $0xe0] sm:$0xff] %v4682_v9   ;;  %v5221_v52 = vpop.f32.mrb[124].mxu1 }
 0x30f   : > { %v3691_v3 = vpop.f32.mrb[125].mxu1  ;;  %v3768_v46 = vadd.f32 %v5221_v52, %v7097_v53 }
 0x310   : > { %v5222_v16 = vpop.f32.mrb[126].mxu1  ;;  %v3766_v25 = vadd.f32 %v7100_v18, %v3691_v3 }
 0x311   : > { %v3769_v37 = vadd.f32 %v5222_v16, %v7098_v35  ;;  %v3694_v17 = vpop.f32.mrb[127].mxu1 }
 0x312   : > { %v3767_v33 = vadd.f32 %v7101_v31, %v3694_v17 }
 0x313   : > { %v4697_v62 = vpack.c.bf16 %v3769_v37, %v3768_v46 }
 0x314   : > { %v4692_v12 = vpack.c.bf16 %v3767_v33, %v3766_v25 }
 0x315   : > { %4760 = vst [vmem:[%s6586_s20 + $0xf8] sm:$0xff] %v4697_v62  }
 0x316   : > { %4759 = vst [vmem:[%s6586_s20 + $0xf0] sm:$0xff] %v4692_v12  }
 0x317   : > { %5342 = shalt.err (!%p5339_p1)
}
 0x318   : > { %s5343_s4 = scalar_lea.hbm %s6743_s16, 4096  ;;  %s5347_s8 = scalar_lea.hbm %s6793_s3, 16384 }
 0x319   : > { %p5344_p3 = scmp.ne.s32.totalorder %s6743_s16, %s5343_s4  ;;  %p5348_p0 = scmp.lt.u32.totalorder %s6743_s16, %s6793_s3 }
 0x31a   : > { %p5349_p2 = scmp.lt.u32.totalorder %s5347_s8, %s5343_s4  ;;  %p5351_p6 = scmp.lt.u32.totalorder %s5343_s4, %s6743_s16 }
 0x31b   : > { %p5345_p4 = pnand %p5344_p3, %p7102_p10 }
 0x31c   : > { %p5350_p7 = por %p5349_p2, %p5348_p0 }
 0x31d   : > { %p5346_p5 = pneg %p5345_p4 }
 0x31e   : > { %p5352_p11 = por %p5351_p6, %p5350_p7 }
 0x320   : > { %p5353_p12 = pnand %p5352_p11, %p5346_p5 }
 0x322   : > { %5356 = shalt.err (!%p5353_p12)
}
 0x323   : > { %s5401_s19 = smov 64   ;;  %s5402_s20 = smov 4  }
 0x324   : > { %5225 = dma.vmem_to_hbm [thread:$0]  (%p7102_p10), %s6745_s22, 4096, %s6743_s16, %s4091_s27, %s5401_s19, %s5401_s19, %s5402_s20  }
 0x325 PF: > { %p5236_p8 = scmp.ge.s32.totalorder %s5395_s15, 2  ;;  %s4119_s9 = sand.u32 1, %s5383_s12  }
 0x326   : > { %p7103_p9 = scmp.ne.s32.totalorder %s6927_s25, 0  ;;  %s4120_s23 = scalar_lea.sflag [#allocation4], %s4119_s9 }
 0x328   : > { %p5232_p13 = pnand %p5236_p8, %p7103_p9 }
 0x32a   : > { %5378 = dma.done.wait (!%p5232_p13), %s4120_s23, 4096  }
 0x32b   : > { %5380 = vsyncadd (!%p5232_p13), %s4120_s23, 4294963200  ;;  %p16_p1 = scmp.ge.s32.totalorder %s5448_s18, 6   ;;  %s7104_s12 = smov %s5387_s13 }
 0x32c   : > { %s7105_s13 = smov %s5391_s14  ;;  %s7106_s14 = smov %s5460_s21 }
 0x32d   : > { %s7107_s15 = smov %s5448_s18  ;;  %18 = sbr.rel (!%p16_p1) target bundleno = 5 (0x5), region = 79 }
 0x334   :  { %4125 = vsyncpa [#allocation3], 1 }
 0x335   :  { %4127 = vsyncpa [#allocation3 + $0x1], 1 }
 0x336   :  { %4128 = vsyncpa [#allocation4], 1 }
 0x337   :  { %4130 = vsyncpa [#allocation4 + $0x1], 1 }

</bundles_post_ra>
